<compile_context>
chip_gen: v6e
topology: v6e:2x2x1
jax: 0.10.0
libtpu: 0.0.40
codegen_flags: <defaults>
</compile_context>

<pallas_src>
import functools

import jax
import jax.numpy as jnp
from jax.experimental import pallas as pl
from jax.experimental.pallas import tpu as pltpu


def seq_decoder_kernel(x_ref, wih_ref, whh_ref, brzn_ref, bhn_ref,
                       linw_ref, linb_ref, egi_ref, ew1_ref, ew2_ref,
                       out_ref, *, aspect_size, hidden_size):
    f32 = jnp.float32
    H = hidden_size
    A = aspect_size

    x_t = x_ref[...]                       # (H, Bt) encoder_x tile, batch on lanes
    Bt = x_t.shape[1]

    # ---- loop-invariant loads (the aspect loop is unrolled at trace time) ----
    w_ih = wih_ref[...]                    # (3H, H) gates [r|z|n]
    w_hh = whh_ref[...]                    # (3H, H)
    b_rzn = brzn_ref[...]                  # (3H, 1)  r,z rows = b_i+b_h ; n row = b_in
    b_hn = bhn_ref[...]                    # (H, 1)   hidden-path bias of the n gate
    lin_w = linw_ref[...]                  # (H, A)   column i = linear[i].weight
    lin_b = linb_ref[...]                  # (1, A)
    emb_gi = egi_ref[...]                  # (3H, A)  column i = W_ih @ e_i
    emb_w1 = ew1_ref[...]                  # (1, A)   w1(e_i)
    ew2 = ew2_ref[...]                     # (1, A)   w2(e_i)

    # Hoisted input projection: x never changes across aspects.
    gi_x = jnp.dot(w_ih, x_t, preferred_element_type=f32) + b_rzn    # (3H, Bt)

    hidden = jnp.zeros((H, Bt), f32)       # _init_hidden
    g_gi = jnp.zeros((3 * H, Bt), f32)     # W_ih @ g            (g = 0.0 initially)
    se_gi = jnp.zeros((3 * H, Bt), f32)    # W_ih @ sum(sum_e)
    se_w1 = jnp.zeros((1, Bt), f32)        # w1(sum(sum_e))

    for i in range(A):
        # --- GRUCell on inp = x + g: only the hidden projection hits the MXU ---
        gi = gi_x + g_gi                                              # W_ih@(x+g) + b
        gh = jnp.dot(w_hh, hidden, preferred_element_type=f32)        # (3H, Bt)

        rz = jax.nn.sigmoid(gi[0:2 * H, :] + gh[0:2 * H, :])          # fused r,z
        r = rz[0:H, :]
        z = rz[H:2 * H, :]
        n = jnp.tanh(gi[2 * H:3 * H, :] + r * (gh[2 * H:3 * H, :] + b_hn))
        hidden = (1.0 - z) * n + z * hidden
        # TODO(synk): nn.Dropout(0.5) is identity here (eval-mode inference).

        # --- per-aspect head: VPU multiply + sublane reduce (no MXU round trip) ---
        logi = (jnp.sum(hidden * lin_w[:, i:i + 1], axis=0, keepdims=True)
                + lin_b[:, i:i + 1])                                  # (1, Bt)
        p = jax.nn.sigmoid(logi)

        # Lane-dense per-iteration stores: row i = logit_i, row A+i = prob_i.
        out_ref[pl.ds(i, 1), :] = logi
        out_ref[pl.ds(A + i, 1), :] = p

        # --- label-embedding feedback, kept entirely in projected space ---
        if i + 1 < A:                       # last iteration's feedback is unused
            h = jax.nn.sigmoid(se_w1 + ew2[:, i:i + 1])               # w1(se)+w2(e)
            e_gi = emb_gi[:, i:i + 1]                                 # (3H, 1)
            g_gi = (1.0 - h) * e_gi + h * se_gi                       # W_ih @ g_next
            mask = (p > 0.5).astype(f32)                              # (1, Bt)
            se_gi = se_gi + mask * e_gi                               # W_ih @ (se+cur_e)
            se_w1 = se_w1 + mask * emb_w1[:, i:i + 1]                 # w1(se+cur_e)


def seq_decoder_forward(x, params, *, aspect_size, hidden_size, block_b=None):
    B = x.shape[0]
    H, A = hidden_size, aspect_size

    # Batch tile on the lane axis: a multiple of 128 (or the full batch), and
    # >=2 grid steps once B >= 256 so ("parallel",) can shard across v7x cores.
    if block_b is None:
        if B >= 256 and B % 128 == 0:
            block_b = 256 if (B % 256 == 0 and B // 256 >= 2) else 128
        else:
            block_b = B
    assert B % block_b == 0
    assert block_b == B or block_b % 128 == 0

    f32 = jnp.float32
    # ---- one-time host-side parameter repacking (fused biases, projections) ----
    w_ih = params["w_ih"].reshape(3 * H, H).astype(f32)     # (3H, H), gates [r|z|n]
    w_hh = params["w_hh"].reshape(3 * H, H).astype(f32)
    b_ih = params["b_ih"].reshape(3 * H, 1).astype(f32)
    b_hh = params["b_hh"].reshape(3 * H, 1).astype(f32)
    # Pre-sum input+hidden biases for r,z; keep b_hn separate (inside r*(...)).
    b_rzn = jnp.concatenate([b_ih[:2 * H] + b_hh[:2 * H], b_ih[2 * H:]], axis=0)
    b_hn = b_hh[2 * H:]                                     # (H, 1)

    lin_w_cols = params["lin_w"].T.astype(f32)              # (H, A)
    lin_b = params["lin_b"].astype(f32)                     # (1, A)

    emb_rows = params["emb"][1:A + 1].astype(f32)           # (A, H) = label_embedding(i+1)
    emb_gi = w_ih @ emb_rows.T                              # (3H, A) = W_ih @ e_i
    emb_w1 = (emb_rows @ params["w1"].T).reshape(1, A)      # (1, A)  = w1(e_i)
    ew2 = (emb_rows @ params["w2"].T).reshape(1, A)         # (1, A)  = w2(e_i)

    x_t = x.astype(f32).T                                   # (H, B) batch-on-lanes

    def full_spec(shape):
        return pl.BlockSpec(shape, lambda b, _n=len(shape): (0,) * _n)

    cost = pl.CostEstimate(
        flops=2 * (3 * H) * H * B * (A + 1) + 20 * A * B * H,
        transcendentals=A * B * (3 * H + 2),
        bytes_accessed=4 * (B * H + 2 * A * B)
        + 4 * (B // block_b) * (2 * 3 * H * H + 4 * H * A + 4 * H + 3 * A),
    )

    kernel = functools.partial(seq_decoder_kernel,
                               aspect_size=A, hidden_size=H)
    out = pl.pallas_call(
        kernel,
        out_shape=jax.ShapeDtypeStruct((2 * A, B), f32),
        grid=(B // block_b,),
        in_specs=[
            pl.BlockSpec((H, block_b), lambda b: (0, b)),   # encoder_x.T (batch tile)
            full_spec((3 * H, H)),                          # w_ih
            full_spec((3 * H, H)),                          # w_hh
            full_spec((3 * H, 1)),                          # fused r,z biases + b_in
            full_spec((H, 1)),                              # b_hn
            full_spec((H, A)),                              # linear[i] weights (columns)
            full_spec((1, A)),                              # linear[i] biases
            full_spec((3 * H, A)),                          # W_ih @ e_i
            full_spec((1, A)),                              # w1(e_i)
            full_spec((1, A)),                              # w2(e_i)
        ],
        out_specs=pl.BlockSpec((2 * A, block_b), lambda b: (0, b)),
        compiler_params=pltpu.CompilerParams(
            dimension_semantics=("parallel",)),
        cost_estimate=cost,
    )(x_t, w_ih, w_hh, b_rzn, b_hn, lin_w_cols, lin_b, emb_gi, emb_w1, ew2)

    logits = out[:A, :].T                                   # (B, A)
    probs = out[A:, :].T                                    # (B, A)
    return logits, probs


def seq_decoder_reference(x, params, *, aspect_size, hidden_size):
    """Pure-JAX mirror of the PyTorch forward (eval mode), f32 throughout."""
    H, A = hidden_size, aspect_size
    B = x.shape[0]
    hp = jax.lax.Precision.HIGHEST
    w_ih = params["w_ih"].reshape(3 * H, H)
    w_hh = params["w_hh"].reshape(3 * H, H)
    b_ih = params["b_ih"].reshape(3 * H)
    b_hh = params["b_hh"].reshape(3 * H)
    emb = params["emb"]

    hidden = jnp.zeros((B, H), jnp.float32)
    g = jnp.zeros((B, H), jnp.float32)
    sum_e = jnp.zeros((B, H), jnp.float32)     # sum of the (initially zero) sum_e list
    logits, probs = [], []
    for i in range(A):
        inp = x + g
        gi = jnp.dot(inp, w_ih.T, precision=hp) + b_ih
        gh = jnp.dot(hidden, w_hh.T, precision=hp) + b_hh
        r = jax.nn.sigmoid(gi[:, :H] + gh[:, :H])
        z = jax.nn.sigmoid(gi[:, H:2 * H] + gh[:, H:2 * H])
        n = jnp.tanh(gi[:, 2 * H:] + r * gh[:, 2 * H:])
        hidden = (1.0 - z) * n + z * hidden
        logi = jnp.dot(hidden, params["lin_w"][i], precision=hp) + params["lin_b"][0, i]
        p = jax.nn.sigmoid(logi)
        se = sum_e
        e = emb[i + 1]
        h = jax.nn.sigmoid(jnp.dot(se, params["w1"][0], precision=hp)
                           + jnp.dot(e, params["w2"][0], precision=hp))
        cur_e = (p > 0.5).astype(jnp.float32)[:, None] * e[None, :]
        sum_e = se + cur_e
        g = (1.0 - h)[:, None] * e[None, :] + h[:, None] * se
        logits.append(logi)
        probs.append(p)
    return jnp.stack(logits, axis=-1), jnp.stack(probs, axis=-1)


def init_params(key, hidden_size, aspect_size):
    """Deterministic synthetic parameters matching the module's shapes."""
    H, A = hidden_size, aspect_size
    ks = jax.random.split(key, 8)
    scale = 0.1
    emb = scale * jax.random.normal(ks[0], (11, H), jnp.float32)
    emb = emb.at[0].set(0.0)  # padding_idx=0
    params = {
        "emb": emb,
        # GRUCell weight_ih (3H, H) / weight_hh (3H, H) stored as (3, H, H), gates [r, z, n]
        "w_ih": scale * jax.random.normal(ks[1], (3, H, H), jnp.float32),
        "w_hh": scale * jax.random.normal(ks[2], (3, H, H), jnp.float32),
        "b_ih": scale * jax.random.normal(ks[3], (3, 1, H), jnp.float32),
        "b_hh": scale * jax.random.normal(ks[4], (3, 1, H), jnp.float32),
        # aspect_size x Linear(H, 1): row i = linear[i].weight (A, H), biases (1, A)
        "lin_w": scale * jax.random.normal(ks[5], (A, H), jnp.float32),
        "lin_b": scale * jax.random.normal(ks[6], (1, A), jnp.float32),
        # w1, w2: Linear(H, 1, bias=False) -> weight shape (1, H)
        "w1": scale * jax.random.normal(ks[7], (1, H), jnp.float32),
        "w2": scale * jax.random.normal(jax.random.fold_in(key, 99),
                                        (1, H), jnp.float32),
    }
    return params


if __name__ == "__main__":
    B = 16           # batch
    H = 32           # hidden_size == input_size (required by encoder_x + g)
    A = 4            # aspect_size

    key = jax.random.PRNGKey(0)
    k_x, k_p = jax.random.split(key)
    encoder_x = jax.random.normal(k_x, (B, H), jnp.float32)
    params = init_params(k_p, H, A)

    logits, probs = seq_decoder_forward(
        encoder_x, params, aspect_size=A, hidden_size=H)
    jax.block_until_ready((logits, probs))

    assert logits.shape == (B, A) and probs.shape == (B, A)
    assert bool(jnp.all(jnp.isfinite(logits))) and bool(jnp.all(jnp.isfinite(probs)))
    assert bool(jnp.all((probs >= 0.0) & (probs <= 1.0)))

    # Correctness vs. a pure-JAX f32 reference of the PyTorch forward.
    ref_logits, ref_probs = seq_decoder_reference(
        encoder_x, params, aspect_size=A, hidden_size=H)
    assert float(jnp.max(jnp.abs(logits - ref_logits))) < 5e-2
    assert float(jnp.max(jnp.abs(probs - ref_probs))) < 2e-2

    print("KERNEL_OK")
</pallas_src>

<mosaic_0001>
module attributes {stable_mosaic.version = 11 : i64} {
  func.func @seq_decoder_kernel(%arg0: i32, %arg1: memref<32x16xf32, #tpu.memory_space<vmem>>, %arg2: memref<96x32xf32, #tpu.memory_space<vmem>>, %arg3: memref<96x32xf32, #tpu.memory_space<vmem>>, %arg4: memref<96x1xf32, #tpu.memory_space<vmem>>, %arg5: memref<32x1xf32, #tpu.memory_space<vmem>>, %arg6: memref<32x4xf32, #tpu.memory_space<vmem>>, %arg7: memref<1x4xf32, #tpu.memory_space<vmem>>, %arg8: memref<96x4xf32, #tpu.memory_space<vmem>>, %arg9: memref<1x4xf32, #tpu.memory_space<vmem>>, %arg10: memref<1x4xf32, #tpu.memory_space<vmem>>, %arg11: memref<8x16xf32, #tpu.memory_space<vmem>>) attributes {dimension_semantics = [#tpu.dimension_semantics<parallel>], iteration_bounds = array<i64: 1>, scalar_prefetch = 0 : i64, scratch_operands = 0 : i64, tpu.core_type = #tpu.core_type<tc>, window_params = [{transform_indices = @transform_0, window_bounds = array<i64: 32, 16>}, {pipeline_mode = #tpu.pipeline_mode<synchronous>, transform_indices = @transform_1, window_bounds = array<i64: 96, 32>}, {pipeline_mode = #tpu.pipeline_mode<synchronous>, transform_indices = @transform_2, window_bounds = array<i64: 96, 32>}, {pipeline_mode = #tpu.pipeline_mode<synchronous>, transform_indices = @transform_3, window_bounds = array<i64: 96, 1>}, {pipeline_mode = #tpu.pipeline_mode<synchronous>, transform_indices = @transform_4, window_bounds = array<i64: 32, 1>}, {pipeline_mode = #tpu.pipeline_mode<synchronous>, transform_indices = @transform_5, window_bounds = array<i64: 32, 4>}, {pipeline_mode = #tpu.pipeline_mode<synchronous>, transform_indices = @transform_6, window_bounds = array<i64: 1, 4>}, {pipeline_mode = #tpu.pipeline_mode<synchronous>, transform_indices = @transform_7, window_bounds = array<i64: 96, 4>}, {pipeline_mode = #tpu.pipeline_mode<synchronous>, transform_indices = @transform_8, window_bounds = array<i64: 1, 4>}, {pipeline_mode = #tpu.pipeline_mode<synchronous>, transform_indices = @transform_9, window_bounds = array<i64: 1, 4>}, {transform_indices = @transform_10, window_bounds = array<i64: 8, 16>}]} {
    %c0 = arith.constant 0 : index
    %c0_0 = arith.constant 0 : index
    %0 = vector.load %arg1[%c0, %c0_0] : memref<32x16xf32, #tpu.memory_space<vmem>>, vector<32x16xf32>
    %c0_1 = arith.constant 0 : index
    %c0_2 = arith.constant 0 : index
    %1 = vector.load %arg2[%c0_1, %c0_2] : memref<96x32xf32, #tpu.memory_space<vmem>>, vector<96x32xf32>
    %c0_3 = arith.constant 0 : index
    %c0_4 = arith.constant 0 : index
    %2 = vector.load %arg3[%c0_3, %c0_4] : memref<96x32xf32, #tpu.memory_space<vmem>>, vector<96x32xf32>
    %c0_5 = arith.constant 0 : index
    %c0_6 = arith.constant 0 : index
    %3 = vector.load %arg4[%c0_5, %c0_6] : memref<96x1xf32, #tpu.memory_space<vmem>>, vector<96x1xf32>
    %c0_7 = arith.constant 0 : index
    %c0_8 = arith.constant 0 : index
    %4 = vector.load %arg5[%c0_7, %c0_8] : memref<32x1xf32, #tpu.memory_space<vmem>>, vector<32x1xf32>
    %c0_9 = arith.constant 0 : index
    %c0_10 = arith.constant 0 : index
    %5 = vector.load %arg6[%c0_9, %c0_10] : memref<32x4xf32, #tpu.memory_space<vmem>>, vector<32x4xf32>
    %c0_11 = arith.constant 0 : index
    %c0_12 = arith.constant 0 : index
    %6 = vector.load %arg7[%c0_11, %c0_12] : memref<1x4xf32, #tpu.memory_space<vmem>>, vector<1x4xf32>
    %c0_13 = arith.constant 0 : index
    %c0_14 = arith.constant 0 : index
    %7 = vector.load %arg8[%c0_13, %c0_14] : memref<96x4xf32, #tpu.memory_space<vmem>>, vector<96x4xf32>
    %c0_15 = arith.constant 0 : index
    %c0_16 = arith.constant 0 : index
    %8 = vector.load %arg9[%c0_15, %c0_16] : memref<1x4xf32, #tpu.memory_space<vmem>>, vector<1x4xf32>
    %c0_17 = arith.constant 0 : index
    %c0_18 = arith.constant 0 : index
    %9 = vector.load %arg10[%c0_17, %c0_18] : memref<1x4xf32, #tpu.memory_space<vmem>>, vector<1x4xf32>
    %cst = arith.constant dense<0.000000e+00> : vector<96x16xf32>
    %10 = tpu.matmul %1, %0, %cst {dimension_numbers = #tpu.dot_dimension_numbers<[1], [0], [0], [1], [0, 0, 1, 1], [], []>} : vector<96x32xf32>, vector<32x16xf32>, vector<96x16xf32> -> vector<96x16xf32>
    %11 = vector.broadcast %3 : vector<96x1xf32> to vector<96x16xf32>
    %12 = arith.addf %10, %11 : vector<96x16xf32>
    %cst_19 = arith.constant 0.000000e+00 : f32
    %13 = vector.broadcast %cst_19 : f32 to vector<32x16xf32>
    %cst_20 = arith.constant 0.000000e+00 : f32
    %14 = vector.broadcast %cst_20 : f32 to vector<96x16xf32>
    %cst_21 = arith.constant 0.000000e+00 : f32
    %15 = vector.broadcast %cst_21 : f32 to vector<96x16xf32>
    %cst_22 = arith.constant 0.000000e+00 : f32
    %16 = vector.broadcast %cst_22 : f32 to vector<1x16xf32>
    %17 = arith.addf %12, %14 : vector<96x16xf32>
    %cst_23 = arith.constant dense<0.000000e+00> : vector<96x16xf32>
    %18 = tpu.matmul %2, %13, %cst_23 {dimension_numbers = #tpu.dot_dimension_numbers<[1], [0], [0], [1], [0, 0, 1, 1], [], []>} : vector<96x32xf32>, vector<32x16xf32>, vector<96x16xf32> -> vector<96x16xf32>
    %19 = vector.extract_strided_slice %17 {offsets = [0, 0], sizes = [64, 16], strides = [1, 1]} : vector<96x16xf32> to vector<64x16xf32>
    %20 = vector.extract_strided_slice %18 {offsets = [0, 0], sizes = [64, 16], strides = [1, 1]} : vector<96x16xf32> to vector<64x16xf32>
    %21 = arith.addf %19, %20 : vector<64x16xf32>
    %22 = arith.negf %21 : vector<64x16xf32>
    %23 = math.exp %22 : vector<64x16xf32>
    %cst_24 = arith.constant 1.000000e+00 : f32
    %24 = vector.broadcast %cst_24 : f32 to vector<64x16xf32>
    %25 = arith.addf %24, %23 : vector<64x16xf32>
    %26 = arith.divf %24, %25 : vector<64x16xf32>
    %27 = vector.extract_strided_slice %26 {offsets = [0, 0], sizes = [32, 16], strides = [1, 1]} : vector<64x16xf32> to vector<32x16xf32>
    %28 = vector.extract_strided_slice %26 {offsets = [32, 0], sizes = [32, 16], strides = [1, 1]} : vector<64x16xf32> to vector<32x16xf32>
    %29 = vector.extract_strided_slice %17 {offsets = [64, 0], sizes = [32, 16], strides = [1, 1]} : vector<96x16xf32> to vector<32x16xf32>
    %30 = vector.extract_strided_slice %18 {offsets = [64, 0], sizes = [32, 16], strides = [1, 1]} : vector<96x16xf32> to vector<32x16xf32>
    %31 = vector.broadcast %4 : vector<32x1xf32> to vector<32x16xf32>
    %32 = arith.addf %30, %31 : vector<32x16xf32>
    %33 = arith.mulf %27, %32 : vector<32x16xf32>
    %34 = arith.addf %29, %33 : vector<32x16xf32>
    %35 = math.tanh %34 : vector<32x16xf32>
    %cst_25 = arith.constant 1.000000e+00 : f32
    %36 = vector.broadcast %cst_25 : f32 to vector<32x16xf32>
    %37 = arith.subf %36, %28 : vector<32x16xf32>
    %38 = arith.mulf %37, %35 : vector<32x16xf32>
    %39 = arith.mulf %28, %13 : vector<32x16xf32>
    %40 = arith.addf %38, %39 : vector<32x16xf32>
    %41 = vector.extract_strided_slice %5 {offsets = [0, 0], sizes = [32, 1], strides = [1, 1]} : vector<32x4xf32> to vector<32x1xf32>
    %42 = vector.broadcast %41 : vector<32x1xf32> to vector<32x16xf32>
    %43 = arith.mulf %40, %42 : vector<32x16xf32>
    %cst_26 = arith.constant dense<0.000000e+00> : vector<16xf32>
    %44 = vector.multi_reduction <add>, %43, %cst_26 [0] : vector<32x16xf32> to vector<16xf32>
    %45 = vector.shape_cast %44 : vector<16xf32> to vector<1x16xf32>
    %46 = vector.extract_strided_slice %6 {offsets = [0, 0], sizes = [1, 1], strides = [1, 1]} : vector<1x4xf32> to vector<1x1xf32>
    %47 = vector.broadcast %46 : vector<1x1xf32> to vector<1x16xf32>
    %48 = arith.addf %45, %47 : vector<1x16xf32>
    %49 = arith.negf %48 : vector<1x16xf32>
    %50 = math.exp %49 : vector<1x16xf32>
    %cst_27 = arith.constant 1.000000e+00 : f32
    %51 = vector.broadcast %cst_27 : f32 to vector<1x16xf32>
    %52 = arith.addf %51, %50 : vector<1x16xf32>
    %53 = arith.divf %51, %52 : vector<1x16xf32>
    %c0_28 = arith.constant 0 : index
    %c0_29 = arith.constant 0 : index
    %54 = vector.load %arg11[%c0_28, %c0_29] : memref<8x16xf32, #tpu.memory_space<vmem>>, vector<1x16xf32>
    tpu.vector_store %arg11[%c0_28, %c0_29], %48 {strides = array<i32>} : memref<8x16xf32, #tpu.memory_space<vmem>>, vector<1x16xf32>,
    %c4 = arith.constant 4 : index
    %c0_30 = arith.constant 0 : index
    %55 = vector.load %arg11[%c4, %c0_30] : memref<8x16xf32, #tpu.memory_space<vmem>>, vector<1x16xf32>
    tpu.vector_store %arg11[%c4, %c0_30], %53 {strides = array<i32>} : memref<8x16xf32, #tpu.memory_space<vmem>>, vector<1x16xf32>,
    %56 = vector.extract_strided_slice %9 {offsets = [0, 0], sizes = [1, 1], strides = [1, 1]} : vector<1x4xf32> to vector<1x1xf32>
    %57 = vector.broadcast %56 : vector<1x1xf32> to vector<1x16xf32>
    %58 = arith.addf %16, %57 : vector<1x16xf32>
    %59 = arith.negf %58 : vector<1x16xf32>
    %60 = math.exp %59 : vector<1x16xf32>
    %cst_31 = arith.constant 1.000000e+00 : f32
    %61 = vector.broadcast %cst_31 : f32 to vector<1x16xf32>
    %62 = arith.addf %61, %60 : vector<1x16xf32>
    %63 = arith.divf %61, %62 : vector<1x16xf32>
    %64 = vector.extract_strided_slice %7 {offsets = [0, 0], sizes = [96, 1], strides = [1, 1]} : vector<96x4xf32> to vector<96x1xf32>
    %cst_32 = arith.constant 1.000000e+00 : f32
    %65 = vector.broadcast %cst_32 : f32 to vector<1x16xf32>
    %66 = arith.subf %65, %63 : vector<1x16xf32>
    %67 = vector.broadcast %66 : vector<1x16xf32> to vector<96x16xf32>
    %68 = vector.broadcast %64 : vector<96x1xf32> to vector<96x16xf32>
    %69 = arith.mulf %67, %68 : vector<96x16xf32>
    %70 = vector.broadcast %63 : vector<1x16xf32> to vector<96x16xf32>
    %71 = arith.mulf %70, %15 : vector<96x16xf32>
    %72 = arith.addf %69, %71 : vector<96x16xf32>
    %cst_33 = arith.constant 5.000000e-01 : f32
    %73 = vector.broadcast %cst_33 : f32 to vector<1x16xf32>
    %74 = arith.cmpf ogt, %53, %73 : vector<1x16xf32>
    %75 = arith.extui %74 : vector<1x16xi1> to vector<1x16xi32>
    %76 = arith.sitofp %75 : vector<1x16xi32> to vector<1x16xf32>
    %77 = vector.broadcast %76 : vector<1x16xf32> to vector<96x16xf32>
    %78 = vector.broadcast %64 : vector<96x1xf32> to vector<96x16xf32>
    %79 = arith.mulf %77, %78 : vector<96x16xf32>
    %80 = arith.addf %15, %79 : vector<96x16xf32>
    %81 = vector.extract_strided_slice %8 {offsets = [0, 0], sizes = [1, 1], strides = [1, 1]} : vector<1x4xf32> to vector<1x1xf32>
    %82 = vector.broadcast %81 : vector<1x1xf32> to vector<1x16xf32>
    %83 = arith.mulf %76, %82 : vector<1x16xf32>
    %84 = arith.addf %16, %83 : vector<1x16xf32>
    %85 = arith.addf %12, %72 : vector<96x16xf32>
    %cst_34 = arith.constant dense<0.000000e+00> : vector<96x16xf32>
    %86 = tpu.matmul %2, %40, %cst_34 {dimension_numbers = #tpu.dot_dimension_numbers<[1], [0], [0], [1], [0, 0, 1, 1], [], []>} : vector<96x32xf32>, vector<32x16xf32>, vector<96x16xf32> -> vector<96x16xf32>
    %87 = vector.extract_strided_slice %85 {offsets = [0, 0], sizes = [64, 16], strides = [1, 1]} : vector<96x16xf32> to vector<64x16xf32>
    %88 = vector.extract_strided_slice %86 {offsets = [0, 0], sizes = [64, 16], strides = [1, 1]} : vector<96x16xf32> to vector<64x16xf32>
    %89 = arith.addf %87, %88 : vector<64x16xf32>
    %90 = arith.negf %89 : vector<64x16xf32>
    %91 = math.exp %90 : vector<64x16xf32>
    %cst_35 = arith.constant 1.000000e+00 : f32
    %92 = vector.broadcast %cst_35 : f32 to vector<64x16xf32>
    %93 = arith.addf %92, %91 : vector<64x16xf32>
    %94 = arith.divf %92, %93 : vector<64x16xf32>
    %95 = vector.extract_strided_slice %94 {offsets = [0, 0], sizes = [32, 16], strides = [1, 1]} : vector<64x16xf32> to vector<32x16xf32>
    %96 = vector.extract_strided_slice %94 {offsets = [32, 0], sizes = [32, 16], strides = [1, 1]} : vector<64x16xf32> to vector<32x16xf32>
    %97 = vector.extract_strided_slice %85 {offsets = [64, 0], sizes = [32, 16], strides = [1, 1]} : vector<96x16xf32> to vector<32x16xf32>
    %98 = vector.extract_strided_slice %86 {offsets = [64, 0], sizes = [32, 16], strides = [1, 1]} : vector<96x16xf32> to vector<32x16xf32>
    %99 = vector.broadcast %4 : vector<32x1xf32> to vector<32x16xf32>
    %100 = arith.addf %98, %99 : vector<32x16xf32>
    %101 = arith.mulf %95, %100 : vector<32x16xf32>
    %102 = arith.addf %97, %101 : vector<32x16xf32>
    %103 = math.tanh %102 : vector<32x16xf32>
    %cst_36 = arith.constant 1.000000e+00 : f32
    %104 = vector.broadcast %cst_36 : f32 to vector<32x16xf32>
    %105 = arith.subf %104, %96 : vector<32x16xf32>
    %106 = arith.mulf %105, %103 : vector<32x16xf32>
    %107 = arith.mulf %96, %40 : vector<32x16xf32>
    %108 = arith.addf %106, %107 : vector<32x16xf32>
    %109 = vector.extract_strided_slice %5 {offsets = [0, 1], sizes = [32, 1], strides = [1, 1]} : vector<32x4xf32> to vector<32x1xf32>
    %110 = vector.broadcast %109 : vector<32x1xf32> to vector<32x16xf32>
    %111 = arith.mulf %108, %110 : vector<32x16xf32>
    %cst_37 = arith.constant dense<0.000000e+00> : vector<16xf32>
    %112 = vector.multi_reduction <add>, %111, %cst_37 [0] : vector<32x16xf32> to vector<16xf32>
    %113 = vector.shape_cast %112 : vector<16xf32> to vector<1x16xf32>
    %114 = vector.extract_strided_slice %6 {offsets = [0, 1], sizes = [1, 1], strides = [1, 1]} : vector<1x4xf32> to vector<1x1xf32>
    %115 = vector.broadcast %114 : vector<1x1xf32> to vector<1x16xf32>
    %116 = arith.addf %113, %115 : vector<1x16xf32>
    %117 = arith.negf %116 : vector<1x16xf32>
    %118 = math.exp %117 : vector<1x16xf32>
    %cst_38 = arith.constant 1.000000e+00 : f32
    %119 = vector.broadcast %cst_38 : f32 to vector<1x16xf32>
    %120 = arith.addf %119, %118 : vector<1x16xf32>
    %121 = arith.divf %119, %120 : vector<1x16xf32>
    %c1 = arith.constant 1 : index
    %c0_39 = arith.constant 0 : index
    %122 = vector.load %arg11[%c1, %c0_39] : memref<8x16xf32, #tpu.memory_space<vmem>>, vector<1x16xf32>
    tpu.vector_store %arg11[%c1, %c0_39], %116 {strides = array<i32>} : memref<8x16xf32, #tpu.memory_space<vmem>>, vector<1x16xf32>,
    %c5 = arith.constant 5 : index
    %c0_40 = arith.constant 0 : index
    %123 = vector.load %arg11[%c5, %c0_40] : memref<8x16xf32, #tpu.memory_space<vmem>>, vector<1x16xf32>
    tpu.vector_store %arg11[%c5, %c0_40], %121 {strides = array<i32>} : memref<8x16xf32, #tpu.memory_space<vmem>>, vector<1x16xf32>,
    %124 = vector.extract_strided_slice %9 {offsets = [0, 1], sizes = [1, 1], strides = [1, 1]} : vector<1x4xf32> to vector<1x1xf32>
    %125 = vector.broadcast %124 : vector<1x1xf32> to vector<1x16xf32>
    %126 = arith.addf %84, %125 : vector<1x16xf32>
    %127 = arith.negf %126 : vector<1x16xf32>
    %128 = math.exp %127 : vector<1x16xf32>
    %cst_41 = arith.constant 1.000000e+00 : f32
    %129 = vector.broadcast %cst_41 : f32 to vector<1x16xf32>
    %130 = arith.addf %129, %128 : vector<1x16xf32>
    %131 = arith.divf %129, %130 : vector<1x16xf32>
    %132 = vector.extract_strided_slice %7 {offsets = [0, 1], sizes = [96, 1], strides = [1, 1]} : vector<96x4xf32> to vector<96x1xf32>
    %cst_42 = arith.constant 1.000000e+00 : f32
    %133 = vector.broadcast %cst_42 : f32 to vector<1x16xf32>
    %134 = arith.subf %133, %131 : vector<1x16xf32>
    %135 = vector.broadcast %134 : vector<1x16xf32> to vector<96x16xf32>
    %136 = vector.broadcast %132 : vector<96x1xf32> to vector<96x16xf32>
    %137 = arith.mulf %135, %136 : vector<96x16xf32>
    %138 = vector.broadcast %131 : vector<1x16xf32> to vector<96x16xf32>
    %139 = arith.mulf %138, %80 : vector<96x16xf32>
    %140 = arith.addf %137, %139 : vector<96x16xf32>
    %cst_43 = arith.constant 5.000000e-01 : f32
    %141 = vector.broadcast %cst_43 : f32 to vector<1x16xf32>
    %142 = arith.cmpf ogt, %121, %141 : vector<1x16xf32>
    %143 = arith.extui %142 : vector<1x16xi1> to vector<1x16xi32>
    %144 = arith.sitofp %143 : vector<1x16xi32> to vector<1x16xf32>
    %145 = vector.broadcast %144 : vector<1x16xf32> to vector<96x16xf32>
    %146 = vector.broadcast %132 : vector<96x1xf32> to vector<96x16xf32>
    %147 = arith.mulf %145, %146 : vector<96x16xf32>
    %148 = arith.addf %80, %147 : vector<96x16xf32>
    %149 = vector.extract_strided_slice %8 {offsets = [0, 1], sizes = [1, 1], strides = [1, 1]} : vector<1x4xf32> to vector<1x1xf32>
    %150 = vector.broadcast %149 : vector<1x1xf32> to vector<1x16xf32>
    %151 = arith.mulf %144, %150 : vector<1x16xf32>
    %152 = arith.addf %84, %151 : vector<1x16xf32>
    %153 = arith.addf %12, %140 : vector<96x16xf32>
    %cst_44 = arith.constant dense<0.000000e+00> : vector<96x16xf32>
    %154 = tpu.matmul %2, %108, %cst_44 {dimension_numbers = #tpu.dot_dimension_numbers<[1], [0], [0], [1], [0, 0, 1, 1], [], []>} : vector<96x32xf32>, vector<32x16xf32>, vector<96x16xf32> -> vector<96x16xf32>
    %155 = vector.extract_strided_slice %153 {offsets = [0, 0], sizes = [64, 16], strides = [1, 1]} : vector<96x16xf32> to vector<64x16xf32>
    %156 = vector.extract_strided_slice %154 {offsets = [0, 0], sizes = [64, 16], strides = [1, 1]} : vector<96x16xf32> to vector<64x16xf32>
    %157 = arith.addf %155, %156 : vector<64x16xf32>
    %158 = arith.negf %157 : vector<64x16xf32>
    %159 = math.exp %158 : vector<64x16xf32>
    %cst_45 = arith.constant 1.000000e+00 : f32
    %160 = vector.broadcast %cst_45 : f32 to vector<64x16xf32>
    %161 = arith.addf %160, %159 : vector<64x16xf32>
    %162 = arith.divf %160, %161 : vector<64x16xf32>
    %163 = vector.extract_strided_slice %162 {offsets = [0, 0], sizes = [32, 16], strides = [1, 1]} : vector<64x16xf32> to vector<32x16xf32>
    %164 = vector.extract_strided_slice %162 {offsets = [32, 0], sizes = [32, 16], strides = [1, 1]} : vector<64x16xf32> to vector<32x16xf32>
    %165 = vector.extract_strided_slice %153 {offsets = [64, 0], sizes = [32, 16], strides = [1, 1]} : vector<96x16xf32> to vector<32x16xf32>
    %166 = vector.extract_strided_slice %154 {offsets = [64, 0], sizes = [32, 16], strides = [1, 1]} : vector<96x16xf32> to vector<32x16xf32>
    %167 = vector.broadcast %4 : vector<32x1xf32> to vector<32x16xf32>
    %168 = arith.addf %166, %167 : vector<32x16xf32>
    %169 = arith.mulf %163, %168 : vector<32x16xf32>
    %170 = arith.addf %165, %169 : vector<32x16xf32>
    %171 = math.tanh %170 : vector<32x16xf32>
    %cst_46 = arith.constant 1.000000e+00 : f32
    %172 = vector.broadcast %cst_46 : f32 to vector<32x16xf32>
    %173 = arith.subf %172, %164 : vector<32x16xf32>
    %174 = arith.mulf %173, %171 : vector<32x16xf32>
    %175 = arith.mulf %164, %108 : vector<32x16xf32>
    %176 = arith.addf %174, %175 : vector<32x16xf32>
    %177 = vector.extract_strided_slice %5 {offsets = [0, 2], sizes = [32, 1], strides = [1, 1]} : vector<32x4xf32> to vector<32x1xf32>
    %178 = vector.broadcast %177 : vector<32x1xf32> to vector<32x16xf32>
    %179 = arith.mulf %176, %178 : vector<32x16xf32>
    %cst_47 = arith.constant dense<0.000000e+00> : vector<16xf32>
    %180 = vector.multi_reduction <add>, %179, %cst_47 [0] : vector<32x16xf32> to vector<16xf32>
    %181 = vector.shape_cast %180 : vector<16xf32> to vector<1x16xf32>
    %182 = vector.extract_strided_slice %6 {offsets = [0, 2], sizes = [1, 1], strides = [1, 1]} : vector<1x4xf32> to vector<1x1xf32>
    %183 = vector.broadcast %182 : vector<1x1xf32> to vector<1x16xf32>
    %184 = arith.addf %181, %183 : vector<1x16xf32>
    %185 = arith.negf %184 : vector<1x16xf32>
    %186 = math.exp %185 : vector<1x16xf32>
    %cst_48 = arith.constant 1.000000e+00 : f32
    %187 = vector.broadcast %cst_48 : f32 to vector<1x16xf32>
    %188 = arith.addf %187, %186 : vector<1x16xf32>
    %189 = arith.divf %187, %188 : vector<1x16xf32>
    %c2 = arith.constant 2 : index
    %c0_49 = arith.constant 0 : index
    %190 = vector.load %arg11[%c2, %c0_49] : memref<8x16xf32, #tpu.memory_space<vmem>>, vector<1x16xf32>
    tpu.vector_store %arg11[%c2, %c0_49], %184 {strides = array<i32>} : memref<8x16xf32, #tpu.memory_space<vmem>>, vector<1x16xf32>,
    %c6 = arith.constant 6 : index
    %c0_50 = arith.constant 0 : index
    %191 = vector.load %arg11[%c6, %c0_50] : memref<8x16xf32, #tpu.memory_space<vmem>>, vector<1x16xf32>
    tpu.vector_store %arg11[%c6, %c0_50], %189 {strides = array<i32>} : memref<8x16xf32, #tpu.memory_space<vmem>>, vector<1x16xf32>,
    %192 = vector.extract_strided_slice %9 {offsets = [0, 2], sizes = [1, 1], strides = [1, 1]} : vector<1x4xf32> to vector<1x1xf32>
    %193 = vector.broadcast %192 : vector<1x1xf32> to vector<1x16xf32>
    %194 = arith.addf %152, %193 : vector<1x16xf32>
    %195 = arith.negf %194 : vector<1x16xf32>
    %196 = math.exp %195 : vector<1x16xf32>
    %cst_51 = arith.constant 1.000000e+00 : f32
    %197 = vector.broadcast %cst_51 : f32 to vector<1x16xf32>
    %198 = arith.addf %197, %196 : vector<1x16xf32>
    %199 = arith.divf %197, %198 : vector<1x16xf32>
    %200 = vector.extract_strided_slice %7 {offsets = [0, 2], sizes = [96, 1], strides = [1, 1]} : vector<96x4xf32> to vector<96x1xf32>
    %cst_52 = arith.constant 1.000000e+00 : f32
    %201 = vector.broadcast %cst_52 : f32 to vector<1x16xf32>
    %202 = arith.subf %201, %199 : vector<1x16xf32>
    %203 = vector.broadcast %202 : vector<1x16xf32> to vector<96x16xf32>
    %204 = vector.broadcast %200 : vector<96x1xf32> to vector<96x16xf32>
    %205 = arith.mulf %203, %204 : vector<96x16xf32>
    %206 = vector.broadcast %199 : vector<1x16xf32> to vector<96x16xf32>
    %207 = arith.mulf %206, %148 : vector<96x16xf32>
    %208 = arith.addf %205, %207 : vector<96x16xf32>
    %209 = arith.addf %12, %208 : vector<96x16xf32>
    %cst_53 = arith.constant dense<0.000000e+00> : vector<96x16xf32>
    %210 = tpu.matmul %2, %176, %cst_53 {dimension_numbers = #tpu.dot_dimension_numbers<[1], [0], [0], [1], [0, 0, 1, 1], [], []>} : vector<96x32xf32>, vector<32x16xf32>, vector<96x16xf32> -> vector<96x16xf32>
    %211 = vector.extract_strided_slice %209 {offsets = [0, 0], sizes = [64, 16], strides = [1, 1]} : vector<96x16xf32> to vector<64x16xf32>
    %212 = vector.extract_strided_slice %210 {offsets = [0, 0], sizes = [64, 16], strides = [1, 1]} : vector<96x16xf32> to vector<64x16xf32>
    %213 = arith.addf %211, %212 : vector<64x16xf32>
    %214 = arith.negf %213 : vector<64x16xf32>
    %215 = math.exp %214 : vector<64x16xf32>
    %cst_54 = arith.constant 1.000000e+00 : f32
    %216 = vector.broadcast %cst_54 : f32 to vector<64x16xf32>
    %217 = arith.addf %216, %215 : vector<64x16xf32>
    %218 = arith.divf %216, %217 : vector<64x16xf32>
    %219 = vector.extract_strided_slice %218 {offsets = [0, 0], sizes = [32, 16], strides = [1, 1]} : vector<64x16xf32> to vector<32x16xf32>
    %220 = vector.extract_strided_slice %218 {offsets = [32, 0], sizes = [32, 16], strides = [1, 1]} : vector<64x16xf32> to vector<32x16xf32>
    %221 = vector.extract_strided_slice %209 {offsets = [64, 0], sizes = [32, 16], strides = [1, 1]} : vector<96x16xf32> to vector<32x16xf32>
    %222 = vector.extract_strided_slice %210 {offsets = [64, 0], sizes = [32, 16], strides = [1, 1]} : vector<96x16xf32> to vector<32x16xf32>
    %223 = vector.broadcast %4 : vector<32x1xf32> to vector<32x16xf32>
    %224 = arith.addf %222, %223 : vector<32x16xf32>
    %225 = arith.mulf %219, %224 : vector<32x16xf32>
    %226 = arith.addf %221, %225 : vector<32x16xf32>
    %227 = math.tanh %226 : vector<32x16xf32>
    %cst_55 = arith.constant 1.000000e+00 : f32
    %228 = vector.broadcast %cst_55 : f32 to vector<32x16xf32>
    %229 = arith.subf %228, %220 : vector<32x16xf32>
    %230 = arith.mulf %229, %227 : vector<32x16xf32>
    %231 = arith.mulf %220, %176 : vector<32x16xf32>
    %232 = arith.addf %230, %231 : vector<32x16xf32>
    %233 = vector.extract_strided_slice %5 {offsets = [0, 3], sizes = [32, 1], strides = [1, 1]} : vector<32x4xf32> to vector<32x1xf32>
    %234 = vector.broadcast %233 : vector<32x1xf32> to vector<32x16xf32>
    %235 = arith.mulf %232, %234 : vector<32x16xf32>
    %cst_56 = arith.constant dense<0.000000e+00> : vector<16xf32>
    %236 = vector.multi_reduction <add>, %235, %cst_56 [0] : vector<32x16xf32> to vector<16xf32>
    %237 = vector.shape_cast %236 : vector<16xf32> to vector<1x16xf32>
    %238 = vector.extract_strided_slice %6 {offsets = [0, 3], sizes = [1, 1], strides = [1, 1]} : vector<1x4xf32> to vector<1x1xf32>
    %239 = vector.broadcast %238 : vector<1x1xf32> to vector<1x16xf32>
    %240 = arith.addf %237, %239 : vector<1x16xf32>
    %241 = arith.negf %240 : vector<1x16xf32>
    %242 = math.exp %241 : vector<1x16xf32>
    %cst_57 = arith.constant 1.000000e+00 : f32
    %243 = vector.broadcast %cst_57 : f32 to vector<1x16xf32>
    %244 = arith.addf %243, %242 : vector<1x16xf32>
    %245 = arith.divf %243, %244 : vector<1x16xf32>
    %c3 = arith.constant 3 : index
    %c0_58 = arith.constant 0 : index
    %246 = vector.load %arg11[%c3, %c0_58] : memref<8x16xf32, #tpu.memory_space<vmem>>, vector<1x16xf32>
    tpu.vector_store %arg11[%c3, %c0_58], %240 {strides = array<i32>} : memref<8x16xf32, #tpu.memory_space<vmem>>, vector<1x16xf32>,
    %c7 = arith.constant 7 : index
    %c0_59 = arith.constant 0 : index
    %247 = vector.load %arg11[%c7, %c0_59] : memref<8x16xf32, #tpu.memory_space<vmem>>, vector<1x16xf32>
    tpu.vector_store %arg11[%c7, %c0_59], %245 {strides = array<i32>} : memref<8x16xf32, #tpu.memory_space<vmem>>, vector<1x16xf32>,
    return
  }
  func.func @transform_0(%arg0: i32) -> (i32, i32) {
    %c0_i32 = arith.constant 0 : i32
    %c0_i32_0 = arith.constant 0 : i32
    return %c0_i32, %arg0 : i32, i32
  }
  func.func @transform_1(%arg0: i32) -> (i32, i32) {
    %c0_i32 = arith.constant 0 : i32
    %c0_i32_0 = arith.constant 0 : i32
    %c0_i32_1 = arith.constant 0 : i32
    return %c0_i32, %c0_i32_0 : i32, i32
  }
  func.func @transform_2(%arg0: i32) -> (i32, i32) {
    %c0_i32 = arith.constant 0 : i32
    %c0_i32_0 = arith.constant 0 : i32
    %c0_i32_1 = arith.constant 0 : i32
    return %c0_i32, %c0_i32_0 : i32, i32
  }
  func.func @transform_3(%arg0: i32) -> (i32, i32) {
    %c0_i32 = arith.constant 0 : i32
    %c0_i32_0 = arith.constant 0 : i32
    %c0_i32_1 = arith.constant 0 : i32
    return %c0_i32, %c0_i32_0 : i32, i32
  }
  func.func @transform_4(%arg0: i32) -> (i32, i32) {
    %c0_i32 = arith.constant 0 : i32
    %c0_i32_0 = arith.constant 0 : i32
    %c0_i32_1 = arith.constant 0 : i32
    return %c0_i32, %c0_i32_0 : i32, i32
  }
  func.func @transform_5(%arg0: i32) -> (i32, i32) {
    %c0_i32 = arith.constant 0 : i32
    %c0_i32_0 = arith.constant 0 : i32
    %c0_i32_1 = arith.constant 0 : i32
    return %c0_i32, %c0_i32_0 : i32, i32
  }
  func.func @transform_6(%arg0: i32) -> (i32, i32) {
    %c0_i32 = arith.constant 0 : i32
    %c0_i32_0 = arith.constant 0 : i32
    %c0_i32_1 = arith.constant 0 : i32
    return %c0_i32, %c0_i32_0 : i32, i32
  }
  func.func @transform_7(%arg0: i32) -> (i32, i32) {
    %c0_i32 = arith.constant 0 : i32
    %c0_i32_0 = arith.constant 0 : i32
    %c0_i32_1 = arith.constant 0 : i32
    return %c0_i32, %c0_i32_0 : i32, i32
  }
  func.func @transform_8(%arg0: i32) -> (i32, i32) {
    %c0_i32 = arith.constant 0 : i32
    %c0_i32_0 = arith.constant 0 : i32
    %c0_i32_1 = arith.constant 0 : i32
    return %c0_i32, %c0_i32_0 : i32, i32
  }
  func.func @transform_9(%arg0: i32) -> (i32, i32) {
    %c0_i32 = arith.constant 0 : i32
    %c0_i32_0 = arith.constant 0 : i32
    %c0_i32_1 = arith.constant 0 : i32
    return %c0_i32, %c0_i32_0 : i32, i32
  }
  func.func @transform_10(%arg0: i32) -> (i32, i32) {
    %c0_i32 = arith.constant 0 : i32
    %c0_i32_0 = arith.constant 0 : i32
    return %c0_i32, %arg0 : i32, i32
  }
}

</mosaic_0001>

<bundles_post_ra>
// kernel: tpu_custom_call.1
= control target key start
LH: loop header
LB: loop body
LE: loop exit
PB: predicated region body
PF: predicated region fallthrough
CT: control target
= control target key end

     0   :  { %vm159_vm0 = vcmask 261120   ;;  %v2419_v2 = vmov 0   ;;  %v3468_v8 = vmov 0.0   ;;  %s3457_s0 = inlined_call_operand.vmem [shape: f32[32,16], index: 0, kind: input, shape index: {}]   ;;  %s3458_s1 = inlined_call_operand.vmem [shape: f32[96,32], index: 1, kind: input, shape index: {}]   ;;  %s3459_s2 = inlined_call_operand.vmem [shape: f32[96,32], index: 2, kind: input, shape index: {}]   ;;  %s3460_s3 = inlined_call_operand.vmem [shape: f32[96,1], index: 3, kind: input, shape index: {}]   ;;  %s3461_s4 = inlined_call_operand.vmem [shape: f32[32,1], index: 4, kind: input, shape index: {}]   ;;  %s3462_s5 = inlined_call_operand.vmem [shape: f32[32,4], index: 5, kind: input, shape index: {}]   ;;  %s3463_s6 = inlined_call_operand.vmem [shape: f32[1,4], index: 6, kind: input, shape index: {}]   ;;  %s3464_s7 = inlined_call_operand.vmem [shape: f32[96,4], index: 7, kind: input, shape index: {}]   ;;  %s3465_s8 = inlined_call_operand.vmem [shape: f32[1,4], index: 8, kind: input, shape index: {}]   ;;  %s3466_s9 = inlined_call_operand.vmem [shape: f32[1,4], index: 9, kind: input, shape index: {}]   ;;  %s3467_s10 = inlined_call_operand.hbm [shape: f32[8,16], index: 10, kind: output, shape index: {}]  }
   0x1   :  { %v39_v0 = vld [vmem:[%s3457_s0 + $0x18] sm:$0xff]  ;;  %v38_v1 = vld [vmem:[%s3457_s0 + $0x10] sm:$0xff]  ;;  %2185 = vset.pattern.permute.xlu0 %v2419_v2  ;;  %v40_v4 = vld [vmem:[%s3458_s1] sm:$0xff]  ;;  %2177 = vmatprep.subr.mxu1 %v3468_v8 }
   0x2   :  { %2053 = vmatprep.subr.mxu0 %v39_v0  ;;  %v67_v3 = vld [vmem:[%s3460_s3 + $0x18] sm:$0xff]  ;;  %v37_v5 = vld [vmem:[%s3457_s0 + $0x8] sm:$0xff]  ;;  %2061 = vmatprep.mubr.msk.f32.mxu0 %vm159_vm0, %v40_v4  ;;  %v66_v6 = vld [vmem:[%s3460_s3 + $0x10] sm:$0xff] }
   0x3   :  { %2054 = vmatpush3.msra.mxu0 %v39_v0  ;;  %116 = vperm.xlu0 %2185, %v67_v3   ;;  %v36_v7 = vld [vmem:[%s3457_s0] sm:$0xff]  ;;  %v2512_v10 = vld [vmem:[%s3459_s2 + $0x28] sm:$0xff]  ;;  %v2520_v12 = vld [vmem:[%s3459_s2 + $0x30] sm:$0xff] }
   0x4   :  { %2055 = vmatprep.subr.mxu0 %v38_v1  ;;  %v2506_v9 = vld [vmem:[%s3459_s2 + $0x20] sm:$0xff]  ;;  %2178 = vmatpush3.msra.mxu1 %v3468_v8  ;;  %v41_v11 = vld [vmem:[%s3458_s1 + $0x8] sm:$0xff]  ;;  %v42_v13 = vld [vmem:[%s3458_s1 + $0x10] sm:$0xff] }
   0x5   :  { %2056 = vmatpush3.msra.mxu0 %v38_v1  ;;  %v71_v14 = vld [vmem:[%s3460_s3 + $0x38] sm:$0xff]  ;;  %2087 = vmatprep.mubr.msk.f32.mxu1 %vm159_vm0, %v2506_v9  ;;  %v2547_v17 = vld [vmem:[%s3459_s2 + $0x40] sm:$0xff]  ;;  %v69_v19 = vld [vmem:[%s3460_s3 + $0x28] sm:$0xff] }
   0x6   :  { %2057 = vmatprep.subr.mxu0 %v37_v5  ;;  %2088 = vmatmul.mubr.msk.f32.vlgmr.msra.gmra.mxu1 %vm159_vm0, %v2512_v10  ;;  %v2538_v15 = vld [vmem:[%s3459_s2 + $0x38] sm:$0xff]  ;;  %v44_v18 = vld [vmem:[%s3458_s1 + $0x20] sm:$0xff]  ;;  %v65_v20 = vld [vmem:[%s3460_s3 + $0x8] sm:$0xff] }
   0x7   :  { %2058 = vmatpush3.msra.mxu0 %v37_v5  ;;  %111 = vperm.xlu0 %2185, %v66_v6   ;;  %v43_v16 = vld [vmem:[%s3458_s1 + $0x18] sm:$0xff]  ;;  %v2568_v21 = vld [vmem:[%s3459_s2 + $0x48] sm:$0xff]  ;;  %v2577_v23 = vld [vmem:[%s3459_s2 + $0x50] sm:$0xff] }
   0x8   :  { %2059 = vmatprep.subr.mxu0 %v36_v7  ;;  %2090 = vmatprep.mubr.msk.f32.mxu1 %vm159_vm0, %v2520_v12  ;;  %v45_v22 = vld [vmem:[%s3458_s1 + $0x28] sm:$0xff]  ;;  %v46_v24 = vld [vmem:[%s3458_s1 + $0x30] sm:$0xff]  ;;  %v79_v25 = vld [vmem:[%s3461_s4 + $0x18] sm:$0xff] }
   0x9   :  { %2060 = vmatpush3.msra.mxu0 %v36_v7  ;;  %2186 = vset.pattern.permute.xlu1 %v2419_v2  ;;  %v64_v26 = vld [vmem:[%s3460_s3] sm:$0xff]  ;;  %v2596_v27 = vld [vmem:[%s3459_s2 + $0x58] sm:$0xff]  ;;  %v78_v30 = vld [vmem:[%s3461_s4 + $0x10] sm:$0xff] }
   0xa   :  { %2062 = vmatmul.mubr.msk.f32.vlgmr.msra.gmra.mxu0 %vm159_vm0, %v41_v11  ;;  %2079 = vmatprep.subr.mxu0 %v3468_v8  ;;  %v47_v28 = vld [vmem:[%s3458_s1 + $0x38] sm:$0xff]  ;;  %v48_v29 = vld [vmem:[%s3458_s1 + $0x40] sm:$0xff]  ;;  %v70_v32 = vld [vmem:[%s3460_s3 + $0x30] sm:$0xff] }
   0xb   :  { %2064 = vmatprep.mubr.msk.f32.mxu0 %vm159_vm0, %v42_v13  ;;  %136 = vperm.xlu0 %2185, %v71_v14   ;;  %v2613_v31 = vld [vmem:[%s3459_s2] sm:$0xff] }
   0xc   :  { %2091 = vmatmul.mubr.msk.f32.gmra.mxu1 %vm159_vm0, %v2538_v15  ;;  %2080 = vmatpush3.msra.mxu0 %v3468_v8 }
   0xd   :  { %2093 = vmatprep.mubr.msk.f32.mxu1 %vm159_vm0, %v2547_v17  ;;  %106 = vperm.xlu1 %2186, %v65_v20  }
   0xe   :  { %2065 = vmatmul.mubr.msk.f32.gmra.mxu0 %vm159_vm0, %v43_v16 }
   0xf   :  { %2067 = vmatprep.mubr.msk.f32.mxu0 %vm159_vm0, %v44_v18  ;;  %126 = vperm.xlu0 %2185, %v69_v19  }
  0x10   :  { %2094 = vmatmul.mubr.msk.f32.gmra.mxu1 %vm159_vm0, %v2568_v21 }
  0x11   :  { %2096 = vmatprep.mubr.msk.f32.mxu1 %vm159_vm0, %v2577_v23  ;;  %101 = vperm.xlu1 %2186, %v64_v26  }
  0x12   :  { %2068 = vmatmul.mubr.msk.f32.gmra.mxu0 %vm159_vm0, %v45_v22 }
  0x13   :  { %2070 = vmatprep.mubr.msk.f32.mxu0 %vm159_vm0, %v46_v24  ;;  %567 = vperm.xlu0 %2185, %v79_v25  }
  0x14   :  { %2097 = vmatmul.mubr.msk.f32.gmra.mxu1 %vm159_vm0, %v2596_v27 }
  0x15   :  { %2107 = vmatprep.mubr.msk.f32.mxu1 %vm159_vm0, %v2613_v31 }
  0x16   :  { %2071 = vmatmul.mubr.msk.f32.gmra.mxu0 %vm159_vm0, %v47_v28 }
  0x17   :  { %15 = vsyncpa [#allocation3], 0  ;;  %2073 = vmatprep.mubr.msk.f32.mxu0 %vm159_vm0, %v48_v29  ;;  %v49_v33 = vld [vmem:[%s3458_s1 + $0x48] sm:$0xff]  ;;  %562 = vperm.xlu0 %2185, %v78_v30   ;;  %v50_v34 = vld [vmem:[%s3458_s1 + $0x50] sm:$0xff]  ;;  %v2421_v1 = vmov 1   ;;  %vm626_vm1 = vcmask 130048  }
  0x18   :  { %v77_v35 = vld [vmem:[%s3461_s4 + $0x8] sm:$0xff]  ;;  %131 = vperm.xlu1 %2186, %v70_v32   ;;  %v68_v36 = vld [vmem:[%s3460_s3 + $0x20] sm:$0xff]  ;;  %v51_v37 = vld [vmem:[%s3458_s1 + $0x58] sm:$0xff]  ;;  %vm656_vm2 = vcmask 122880  }
  0x19   :  { %v76_v38 = vld [vmem:[%s3461_s4] sm:$0xff]  ;;  %v75_v39 = vld [vmem:[%s3460_s3 + $0x58] sm:$0xff]  ;;  %v2651_v40 = vld [vmem:[%s3459_s2 + $0x8] sm:$0xff] }
  0x1a   :  { %2074 = vmatmul.mubr.msk.f32.gmra.mxu0 %vm159_vm0, %v49_v33  ;;  %v2656_v41 = vld [vmem:[%s3459_s2 + $0x10] sm:$0xff]  ;;  %v2661_v42 = vld [vmem:[%s3466_s9] sm:$0x1]  ;;  %v2673_v44 = vld [vmem:[%s3459_s2 + $0x18] sm:$0xff] }
  0x1b   :  { %2076 = vmatprep.mubr.msk.f32.mxu0 %vm159_vm0, %v50_v34  ;;  %557 = vperm.xlu0 %2185, %v77_v35   ;;  %v74_v43 = vld [vmem:[%s3460_s3 + $0x50] sm:$0xff]  ;;  %v73_v46 = vld [vmem:[%s3460_s3 + $0x48] sm:$0xff]  ;;  %v2692_v47 = vld [vmem:[%s3464_s7] sm:$0xff] }
  0x1c   :  { %121 = vperm.xlu1 %2186, %v68_v36   ;;  %v2679_v45 = vld [vmem:[%s3464_s7 + $0x10] sm:$0xff]  ;;  %v72_v48 = vld [vmem:[%s3460_s3 + $0x40] sm:$0xff]  ;;  %v2706_v50 = vld [vmem:[%s3464_s7 + $0x18] sm:$0xff] }
  0x1d   :  { %v2701_v49 = vld [vmem:[%s3464_s7 + $0x30] sm:$0xff]  ;;  %v2713_v51 = vld [vmem:[%s3464_s7 + $0x20] sm:$0xff]  ;;  %v2718_v52 = vld [vmem:[%s3464_s7 + $0x8] sm:$0xff] }
  0x1e   :  { %2077 = vmatmul.mubr.msk.f32.gmra.mxu0 %vm159_vm0, %v51_v37  ;;  %v2725_v53 = vld [vmem:[%s3464_s7 + $0x50] sm:$0xff]  ;;  %v2730_v54 = vld [vmem:[%s3464_s7 + $0x38] sm:$0xff]  ;;  %v2737_v55 = vld [vmem:[%s3464_s7 + $0x40] sm:$0xff] }
  0x1f   :  { %2081 = vmatprep.mubr.msk.f32.mxu0 %vm159_vm0, %v2613_v31  ;;  %552 = vperm.xlu0 %2185, %v76_v38   ;;  %v2742_v56 = vld [vmem:[%s3464_s7 + $0x28] sm:$0xff]  ;;  %v2754_v58 = vld [vmem:[%s3464_s7 + $0x58] sm:$0xff]  ;;  %v97_v61 = vld [vmem:[%s3465_s8] sm:$0x1] }
  0x20   :  { %156 = vperm.xlu1 %2186, %v75_v39   ;;  %v2749_v57 = vld [vmem:[%s3462_s5 + $0x8] sm:$0xff]  ;;  %v2761_v59 = vld [vmem:[%s3462_s5 + $0x18] sm:$0xff]  ;;  %v2776_v62 = vld [vmem:[%s3462_s5] sm:$0xff] }
  0x21   :  { %3532 = vst [vmem:[#allocation5_spill] sm:$0xff] %v2749_v57  ;;  %3533 = vst [vmem:[#allocation6_spill] sm:$0xff] %v2761_v59  ;;  %v2766_v60 = vld [vmem:[%s3464_s7 + $0x48] sm:$0xff]  ;;  %v2782_v63 = vld [vmem:[%s3462_s5 + $0x10] sm:$0xff] }
  0x22   :  { %2082 = vmatmul.mubr.msk.f32.vlgmr.msra.gmra.mxu0 %vm159_vm0, %v2651_v40  ;;  %3534 = vst [vmem:[#allocation7_spill] sm:$0xff] %v2782_v63  ;;  %v2788_v0 = vld [vmem:[%s3463_s6] sm:$0x1] }
  0x23   :  { %2084 = vmatprep.mubr.msk.f32.mxu0 %vm159_vm0, %v2656_v41  ;;  %661 = vperm.xlu0 %2185, %v2661_v42   ;;  %3535 = vst [vmem:[#allocation8_spill] sm:$0xff] %v2788_v0 }
  0x24   :  { %151 = vperm.xlu1 %2186, %v74_v43  }
  0x26   :  { %2085 = vmatmul.mubr.msk.f32.gmra.mxu0 %vm159_vm0, %v2673_v44 }
  0x27   :  { %688 = vperm.xlu0 %2185, %v2679_v45   ;;  %2133 = vmatprep.mubr.msk.f32.mxu0 %vm159_vm0, %v2613_v31 }
  0x28   :  { %146 = vperm.xlu1 %2186, %v73_v46  }
  0x2b   :  { %678 = vperm.xlu0 %2185, %v2692_v47  }
  0x2c   :  { %141 = vperm.xlu1 %2186, %v72_v48  }
  0x2f   :  { %708 = vperm.xlu0 %2185, %v2701_v49  }
  0x30   :  { %693 = vperm.xlu1 %2186, %v2706_v50  }
  0x33   :  { %698 = vperm.xlu0 %2185, %v2713_v51  }
  0x34   :  { %683 = vperm.xlu1 %2186, %v2718_v52  }
  0x37   :  { %728 = vperm.xlu0 %2185, %v2725_v53  }
  0x38   :  { %713 = vperm.xlu1 %2186, %v2730_v54  }
  0x3b   :  { %718 = vperm.xlu0 %2185, %v2737_v55  }
  0x3c   :  { %703 = vperm.xlu1 %2186, %v2742_v56  }
  0x3f   :  { %609 = vperm.xlu0 %2185, %v2749_v57  }
  0x40   :  { %733 = vperm.xlu1 %2186, %v2754_v58  }
  0x43   :  { %619 = vperm.xlu0 %2185, %v2761_v59  }
  0x44   :  { %723 = vperm.xlu1 %2186, %v2766_v60  }
  0x47   :  { %790 = vperm.xlu0 %2185, %v97_v61  }
  0x48   :  { %604 = vperm.xlu1 %2186, %v2776_v62  }
  0x4b   :  { %2188 = vset.pattern.permute.xlu0 %v2421_v1 }
  0x4c   :  { %614 = vperm.xlu1 %2186, %v2782_v63   ;;  %1103 = vperm.xlu0 %2188, %v2706_v50  }
  0x50   :  { %642 = vperm.xlu1 %2186, %v2788_v0   ;;  %1091 = vperm.xlu0 %2188, %v2692_v47  }
  0x54   :  { %2187 = vset.pattern.permute.xlu1 %v2421_v1  ;;  %1115 = vperm.xlu0 %2188, %v2701_v49  }
  0x55   :  { %1075 = vperm.xlu1 %2187, %v2661_v42  }
  0x58   :  { %1107 = vperm.xlu0 %2188, %v2713_v51  }
  0x59   :  { %1099 = vperm.xlu1 %2187, %v2679_v45  }
  0x5c   :  { %1131 = vperm.xlu0 %2188, %v2725_v53  }
  0x5d   :  { %1095 = vperm.xlu1 %2187, %v2718_v52  }
  0x60   :  { %1123 = vperm.xlu0 %2188, %v2737_v55  }
  0x61   :  { %1119 = vperm.xlu1 %2187, %v2730_v54  }
  0x64   :  { %1029 = vperm.xlu0 %2188, %v2749_v57  }
  0x65   :  { %1111 = vperm.xlu1 %2187, %v2742_v56  }
  0x68   :  { %1037 = vperm.xlu0 %2188, %v2761_v59  }
  0x69   :  { %1135 = vperm.xlu1 %2187, %v2754_v58  }
  0x6c   :  { %1202 = vperm.xlu0 %2188, %v97_v61  }
  0x6d   :  { %1127 = vperm.xlu1 %2187, %v2766_v60  }
  0x71   :  { %1025 = vperm.xlu1 %2187, %v2776_v62  }
  0x75   :  { %1033 = vperm.xlu1 %2187, %v2782_v63  }
  0x79   :  { %1058 = vperm.xlu1 %2187, %v2788_v0  }
  0x7e   :  { %v117_v2 = vpop.permute.xlu0 %116 }
  0x82   :  { %v112_v3 = vpop.permute.xlu0 %111 }
  0x86   :  { %v137_v7 = vpop.permute.xlu0 %136 }
  0x88   :  { %v107_v4 = vpop.permute.xlu1 %106 }
  0x8a   :  { %v127_v18 = vpop.permute.xlu0 %126 }
  0x8c   :  { %v102_v13 = vpop.permute.xlu1 %101 }
  0x8e   :  { %v2809_v25 = vpop.permute.xlu0 %567 }
  0x8f   :  { %3536 = vst [vmem:[#allocation9_spill] sm:$0xff] %v2809_v25 }
  0x92   :  { %v2817_v33 = vpop.permute.xlu0 %562 }
  0x93   :  { %v132_v20 = vpop.permute.xlu1 %131  ;;  %3537 = vst [vmem:[#allocation10_spill] sm:$0xff] %v2817_v33 }
  0x96   :  { %v2833_v0 = vpop.permute.xlu0 %557 }
  0x97   :  { %v122_v28 = vpop.permute.xlu1 %121  ;;  %3541 = vst [vmem:[#allocation14_spill] sm:$0xff] %v2833_v0 }
  0x9b   :  { %v2821_v35 = vpop.permute.xlu1 %156 }
  0x9f   :  { %v2835_v63 = vpop.permute.xlu1 %151 }
  0xc6   :  { %v2089_v32 = vpop.f32.mrf.mxu1 }
  0xc8   :  { %v455_v39 = vpop.f32.mrf.mxu1 }
  0xca   :  { %v2063_v5 = vpop.f32.mrf.mxu0 }
  0xcb   :  { %v2823_v36 = vadd.f32 %v2063_v5, %v107_v4 }
  0xcc   :  { %v262_v6 = vpop.f32.mrf.mxu0  ;;  %v2092_v5 = vpop.f32.mrf.mxu1 }
  0xcd   :  { %v2825_v38 = vadd.f32 %v262_v6, %v102_v13 }
  0xce   :  { %v2066_v11 = vpop.f32.mrf.mxu0 }
  0xcf   :  { %3538 = vst [vmem:[#allocation11_spill] sm:$0xff] %v2825_v38  ;;  %v2828_v48 = vadd.f32 %v2066_v11, %v117_v2 }
  0xd0   :  { %v272_v14 = vpop.f32.mrf.mxu0 }
  0xd1   :  { %3539 = vst [vmem:[#allocation12_spill] sm:$0xff] %v2828_v48  ;;  %v2837_v4 = vadd.f32 %v272_v14, %v112_v3  ;;  %v465_v3 = vpop.f32.mrf.mxu1 }
  0xd2   :  { %v2069_v16 = vpop.f32.mrf.mxu0 }
  0xd3   :  { %v2830_v61 = vadd.f32 %v2069_v16, %v127_v18  ;;  %3542 = vst [vmem:[#allocation15_spill] sm:$0xff] %v2837_v4 }
  0xd4   :  { %v282_v19 = vpop.f32.mrf.mxu0 }
  0xd5   :  { %3540 = vst [vmem:[#allocation13_spill] sm:$0xff] %v2830_v61  ;;  %v499_v11 = vadd.f32 %v2089_v32, %v2830_v61 }
  0xd6   :  { %v2072_v22 = vpop.f32.mrf.mxu0 }
  0xd7   :  { %v2843_v16 = vadd.f32 %v2072_v22, %v137_v7 }
  0xd8   :  { %v292_v24 = vpop.f32.mrf.mxu0 }
  0xd9   :  { %3544 = vst [vmem:[#allocation17_spill] sm:$0xff] %v2843_v16 }
  0xda   :  { %v2811_v26 = vpop.f32.mrf.mxu0 }
  0xdc   :  { %v2813_v29 = vpop.f32.mrf.mxu0 }
  0xde   :  { %v2815_v30 = vpop.f32.mrf.mxu0 }
  0xe0   :  { %v2819_v34 = vpop.f32.mrf.mxu0 }
  0xe2   :  { %v2083_v37 = vpop.f32.mrf.mxu0 }
  0xe3   :  { %v495_v43 = vadd.f32 %v2083_v37, %v2823_v36  ;;  %v2840_v37 = vadd.f32 %v282_v19, %v122_v28  ;;  %v1904_v19 = vmul.f32 -1.442695, %v499_v11  ;;  %v501_v28 = vadd.f32 %v2092_v5, %v2843_v16 }
  0xe4   :  { %v435_v46 = vpop.f32.mrf.mxu0 }
  0xe5   :  { %v1900_v1 = vmul.f32 -1.442695, %v495_v43  ;;  %v494_v8 = vadd.f32 %v435_v46, %v2825_v38  ;;  %3543 = vst [vmem:[#allocation16_spill] sm:$0xff] %v2840_v37  ;;  %v2846_v46 = vadd.f32 %v292_v24, %v132_v20  ;;  %v1906_v32 = vmul.f32 -1.442695, %v501_v28 }
  0xe6   :  { %v2086_v59 = vpop.f32.mrf.mxu0 }
  0xe7   :  { %2198 = vpow2.f32 %v1900_v1  ;;  %v1899_v6 = vmul.f32 -1.442695, %v494_v8  ;;  %v497_v13 = vadd.f32 %v2086_v59, %v2828_v48  ;;  %3545 = vst [vmem:[#allocation18_spill] sm:$0xff] %v2846_v46  ;;  %v498_v1 = vadd.f32 %v455_v39, %v2840_v37  ;;  %v2849_v8 = vpop.permute.xlu0 %552  ;;  %v147_v59 = vpop.permute.xlu1 %146 }
  0xe8   :  { %v445_v2 = vpop.f32.mrf.mxu0  ;;  %3546 = vst [vmem:[#allocation19_spill] sm:$0xff] %v2849_v8  ;;  %v500_v7 = vadd.f32 %v465_v3, %v2846_v46  ;;  %v2095_v3 = vpop.f32.mrf.mxu1 }
  0xe9   :  { %v1902_v18 = vmul.f32 -1.442695, %v497_v13  ;;  %v496_v43 = vadd.f32 %v445_v2, %v2837_v4  ;;  %2200 = vpow2.f32 %v1899_v6  ;;  %v1903_v22 = vmul.f32 -1.442695, %v498_v1 }
  0xea   :  { %v1905_v20 = vmul.f32 -1.442695, %v500_v7 }
  0xeb   :  { %v1901_v14 = vmul.f32 -1.442695, %v496_v43  ;;  %2202 = vpow2.f32 %v1902_v18  ;;  %v2853_v24 = vpop.permute.xlu0 %661  ;;  %v142_v6 = vpop.permute.xlu1 %141 }
  0xed   :  { %2204 = vpow2.f32 %v1901_v14 }
  0xee   :  { %2206 = vpow2.f32 %v1904_v19 }
  0xef   :  { %2208 = vpow2.f32 %v1903_v22  ;;  %v2855_v18 = vpop.permute.xlu0 %688  ;;  %v2857_v43 = vpop.permute.xlu1 %693 }
  0xf0   :  { %2210 = vpow2.f32 %v1906_v32  ;;  %v475_v22 = vpop.f32.mrf.mxu1 }
  0xf1   :  { %2212 = vpow2.f32 %v1905_v20  ;;  %v570_v61 = vadd.f32 %v2849_v8, %v475_v22  ;;  %v3495_v22 = vmov 2  }
  0xf2   :  { %2189 = vset.pattern.permute.xlu1 %v3495_v22  ;;  %2190 = vset.pattern.permute.xlu0 %v3495_v22 }
  0xf3   :  { %v2859_v28 = vpop.permute.xlu0 %678  ;;  %v2861_v32 = vpop.permute.xlu1 %683  ;;  %1487 = vperm.xlu1 %2189, %v2661_v42   ;;  %1503 = vperm.xlu0 %2190, %v2692_v47  }
  0xf4   :  { %v2199_v13 = vpop.eup %2198 }
  0xf5   :  { %v527_v39 = vadd.f32 1.0, %v2199_v13 }
  0xf6   :  { %v2201_v2 = vpop.eup %2200 }
  0xf7   :  { %2214 = vrcp.f32 %v527_v39  ;;  %v526_v5 = vadd.f32 1.0, %v2201_v2  ;;  %v2098_v2 = vpop.f32.mrf.mxu1  ;;  %v2863_v46 = vpop.permute.xlu0 %708  ;;  %1507 = vperm.xlu1 %2189, %v2718_v52   ;;  %1515 = vperm.xlu0 %2190, %v2706_v50  }
  0xf8   :  { %v2203_v11 = vpop.eup %2202  ;;  %3547 = vst [vmem:[#allocation20_spill] sm:$0xff] %v2863_v46 }
  0xf9   :  { %2216 = vrcp.f32 %v526_v5  ;;  %v529_v14 = vadd.f32 1.0, %v2203_v11  ;;  %v571_v5 = vadd.f32 %v2095_v3, %v2833_v0  ;;  %v2874_v3 = vadd.f32 %v2813_v29, %v142_v6 }
  0xfa   :  { %v2205_v1 = vpop.eup %2204 }
  0xfb   :  { %2218 = vrcp.f32 %v529_v14  ;;  %v528_v19 = vadd.f32 1.0, %v2205_v1  ;;  %v2207_v7 = vpop.eup %2206  ;;  %v2866_v14 = vpop.permute.xlu1 %713  ;;  %v2869_v1 = vadd.f32 %v2811_v26, %v147_v59  ;;  %3549 = vst [vmem:[#allocation22_spill] sm:$0xff] %v2874_v3  ;;  %v2882_v59 = vadd.f32 %v2815_v30, %v2821_v35  ;;  %1511 = vperm.xlu1 %2189, %v2679_v45   ;;  %1523 = vperm.xlu0 %2190, %v2742_v56  }
  0xfc   :  { %v2209_v20 = vpop.eup %2208  ;;  %v531_v13 = vadd.f32 1.0, %v2207_v7  ;;  %v485_v7 = vpop.f32.mrf.mxu1  ;;  %v2893_v30 = vadd.f32 %v2819_v34, %v2835_v63 }
  0xfd   :  { %2220 = vrcp.f32 %v528_v19  ;;  %v2211_v39 = vpop.eup %2210  ;;  %v530_v16 = vadd.f32 1.0, %v2209_v20  ;;  %3548 = vst [vmem:[#allocation21_spill] sm:$0xff] %v2869_v1  ;;  %v573_v20 = vadd.f32 %v2098_v2, %v2809_v25  ;;  %v2877_v46 = vpop.permute.xlu0 %698  ;;  %v572_v26 = vadd.f32 %v2817_v33, %v485_v7  ;;  %3550 = vst [vmem:[#allocation23_spill] sm:$0xff] %v2882_v59 }
  0xfe   :  { %v2213_v57 = vpop.eup %2212  ;;  %2222 = vrcp.f32 %v531_v13  ;;  %v533_v37 = vadd.f32 1.0, %v2211_v39  ;;  %3551 = vst [vmem:[#allocation24_spill] sm:$0xff] %v2893_v30 }
  0xff   :  { %v532_v48 = vadd.f32 1.0, %v2213_v57  ;;  %2224 = vrcp.f32 %v530_v16  ;;  %1519 = vperm.xlu1 %2189, %v2713_v51   ;;  %1531 = vperm.xlu0 %2190, %v2730_v54  }
 0x103   :  { %1527 = vperm.xlu1 %2189, %v2701_v49   ;;  %1539 = vperm.xlu0 %2190, %v2766_v60  }
 0x104   :  { %v2215_v11 = vpop.eup %2214 }
 0x105   :  { %v575_v19 = vmul.f32 %v2215_v11, %v571_v5 }
 0x106   :  { %v2217_v4 = vpop.eup %2216 }
 0x107   :  { %v579_v38 = vadd.f32 %v575_v19, %v2869_v1  ;;  %v574_v0 = vmul.f32 %v2217_v4, %v570_v61  ;;  %v2887_v61 = vpop.permute.xlu1 %703  ;;  %v2897_v4 = vpop.permute.xlu0 %728  ;;  %1535 = vperm.xlu1 %2189, %v2737_v55   ;;  %1547 = vperm.xlu0 %2190, %v2754_v58  }
 0x108   :  { %v2219_v13 = vpop.eup %2218 }
 0x109   :  { %2226 = vtanh.f32 %v579_v38  ;;  %v578_v57 = vadd.f32 %v574_v0, %v2874_v3  ;;  %v577_v16 = vmul.f32 %v2219_v13, %v573_v20 }
 0x10a   :  { %2228 = vrcp.f32 %v533_v37  ;;  %v2221_v29 = vpop.eup %2220 }
 0x10b   :  { %2230 = vrcp.f32 %v532_v48  ;;  %v581_v0 = vadd.f32 %v577_v16, %v2882_v59  ;;  %v576_v35 = vmul.f32 %v2221_v29, %v572_v26  ;;  %v2901_v42 = vpop.permute.xlu1 %733  ;;  %v2223_v47 = vpop.eup %2222  ;;  %1543 = vperm.xlu1 %2189, %v2725_v53   ;;  %v645_v53 = vlaneseq }
 0x10c   :  { %2232 = vtanh.f32 %v578_v57  ;;  %v2225_v63 = vpop.eup %2224  ;;  %v2905_v34 = vpop.permute.xlu0 %718  ;;  %v587_v48 = vsub.f32 1.0, %v2223_v47  ;;  %v595_v52 = vmul.f32 0.0, %v2223_v47 }
 0x10d   :  { %2234 = vtanh.f32 %v581_v0  ;;  %v580_v38 = vadd.f32 %v576_v35, %v2893_v30  ;;  %v586_v5 = vsub.f32 1.0, %v2225_v63  ;;  %v594_v7 = vmul.f32 0.0, %v2225_v63 }
 0x10f   :  { %2236 = vtanh.f32 %v580_v38  ;;  %v2907_v39 = vpop.permute.xlu1 %723  ;;  %1437 = vperm.xlu1 %2189, %v2776_v62  }
 0x110   :  { %v610_v13 = vpop.permute.xlu0 %609 }
 0x113   :  { %v605_v26 = vpop.permute.xlu1 %604 }
 0x116   :  { %v2227_v37 = vpop.eup %2226 }
 0x117   :  { %v2229_v6 = vpop.eup %2228  ;;  %v591_v2 = vmul.f32 %v2227_v37, %v587_v48  ;;  %v620_v48 = vpop.permute.xlu0 %619 }
 0x118   :  { %v2231_v50 = vpop.eup %2230  ;;  %v589_v45 = vsub.f32 1.0, %v2229_v6  ;;  %v597_v51 = vmul.f32 0.0, %v2229_v6  ;;  %v615_v37 = vpop.permute.xlu1 %614 }
 0x119   :  { %v2233_v11 = vpop.eup %2232  ;;  %v2911_v19 = vadd.f32 %v595_v52, %v591_v2  ;;  %v588_v16 = vsub.f32 1.0, %v2231_v50  ;;  %v596_v0 = vmul.f32 0.0, %v2231_v50 }
 0x11a   :  { %v590_v56 = vmul.f32 %v2233_v11, %v586_v5  ;;  %v2235_v20 = vpop.eup %2234 }
 0x11b   :  { %v593_v57 = vmul.f32 %v2235_v20, %v589_v45  ;;  %v623_v47 = vmul.f32 %v610_v13, %v2911_v19 }
 0x11c   :  { %v2915_v54 = vadd.f32 %v594_v7, %v590_v56  ;;  %v2237_v29 = vpop.eup %2236  ;;  %v646_v7 = vshrl.u32 %v645_v53, 7 }
 0x11d   :  { %v2917_v35 = vadd.f32 %v597_v51, %v593_v57  ;;  %v592_v38 = vmul.f32 %v2237_v29, %v588_v16  ;;  %v628_v55 = vsel %vm626_vm1, %v623_v47, 0.0 }
 0x11e   :  { %v622_v63 = vmul.f32 %v605_v26, %v2915_v54  ;;  %v643_v26 = vpop.permute.xlu1 %642 }
 0x11f   :  { %2099 = vmatprep.subr.mxu1 %v2917_v35  ;;  %v2924_v49 = vadd.f32 %v596_v0, %v592_v38  ;;  %v625_v6 = vmul.f32 %v620_v48, %v2917_v35 }
 0x120   :  { %v627_v60 = vsel %vm626_vm1, %v622_v63, 0.0  ;;  %2100 = vmatpush3.msra.mxu1 %v2917_v35 }
 0x121   :  { %v624_v2 = vmul.f32 %v615_v37, %v2924_v49  ;;  %2101 = vmatprep.subr.mxu1 %v2924_v49  ;;  %v629_v58 = vadd.f32 %v628_v55, %v627_v60  ;;  %v632_v5 = vsel %vm626_vm1, %v625_v6, 0.0 }
 0x122   :  { %2102 = vmatpush3.msra.mxu1 %v2924_v49 }
 0x123   :  { %v630_v50 = vsel %vm626_vm1, %v624_v2, 0.0  ;;  %2103 = vmatprep.subr.mxu1 %v2911_v19 }
 0x124   :  { %2104 = vmatpush3.msra.mxu1 %v2911_v19  ;;  %v631_v52 = vadd.f32 %v630_v50, %v629_v58 }
 0x125   :  { %2105 = vmatprep.subr.mxu1 %v2915_v54 }
 0x126   :  { %v633_v11 = vadd.f32 %v632_v5, %v631_v52  ;;  %2106 = vmatpush3.msra.mxu1 %v2915_v54 }
 0x127   :  { %2108 = vmatmul.mubr.msk.f32.vlgmr.msra.gmra.mxu1 %vm159_vm0, %v2651_v40  ;;  %v2951_v40 = vsub.s32 0, %v646_v7  ;;  %v3553_v7 = vld [vmem:[#allocation11_spill] sm:$0xff] }
 0x128   :  { %v634_v45 = vrot.slane %v633_v11, 4  ;;  %2110 = vmatprep.mubr.msk.f32.mxu1 %vm159_vm0, %v2656_v41 }
 0x129   :  { %v648_v41 = vrot.slane %v643_v26, %v2951_v40 }
 0x12a   :  { %v635_v56 = vadd.f32 %v634_v45, %v633_v11 }
 0x12b   :  { %2111 = vmatmul.mubr.msk.f32.gmra.mxu1 %vm159_vm0, %v2673_v44 }
 0x12c   :  { %v636_v20 = vrot.slane %v635_v56, 2  ;;  %2113 = vmatprep.mubr.msk.f32.mxu1 %vm159_vm0, %v2506_v9 }
 0x12e   :  { %v637_v13 = vadd.f32 %v636_v20, %v635_v56 }
 0x12f   :  { %2114 = vmatmul.mubr.msk.f32.gmra.mxu1 %vm159_vm0, %v2512_v10 }
 0x130   :  { %v638_v57 = vrot.slane %v637_v13, 1  ;;  %2116 = vmatprep.mubr.msk.f32.mxu1 %vm159_vm0, %v2520_v12 }
 0x132   :  { %v639_v51 = vadd.f32 %v638_v57, %v637_v13 }
 0x133   :  { %2117 = vmatmul.mubr.msk.f32.gmra.mxu1 %vm159_vm0, %v2538_v15  ;;  %v791_v15 = vpop.permute.xlu0 %790 }
 0x134   :  { %v649_v16 = vadd.f32 %v648_v41, %v639_v51  ;;  %2119 = vmatprep.mubr.msk.f32.mxu1 %vm159_vm0, %v2547_v17  ;;  %v796_v29 = vrot.slane %v791_v15, %v2951_v40 }
 0x136   :  { %v1907_v9 = vmul.f32 -1.442695, %v649_v16  ;;  %657 = vst.msk [vmem:[#allocation2] sm:$0x1] %vm656_vm2, %v649_v16  ;;  %v3554_v16 = vld [vmem:[#allocation12_spill] sm:$0xff] }
 0x137   :  { %2120 = vmatmul.mubr.msk.f32.gmra.mxu1 %vm159_vm0, %v2568_v21  ;;  %v3552_v21 = vmov 0.0  }
 0x138   :  { %2238 = vpow2.f32 %v1907_v9  ;;  %2122 = vmatprep.mubr.msk.f32.mxu1 %vm159_vm0, %v2577_v23 }
 0x13b   :  { %2123 = vmatmul.mubr.msk.f32.gmra.mxu1 %vm159_vm0, %v2596_v27  ;;  %v667_v27 = vrot.slane %v2853_v24, %v2951_v40 }
 0x13c   :  { %2159 = vmatprep.mubr.msk.f32.mxu1 %vm159_vm0, %v2613_v31 }
 0x13d   :  { %v1908_v31 = vmul.f32 -1.442695, %v667_v27 }
 0x145   :  { %v2239_v10 = vpop.eup %2238 }
 0x146   :  { %v653_v12 = vadd.f32 1.0, %v2239_v10  ;;  %v3555_v10 = vld [vmem:[#allocation20_spill] sm:$0xff] }
 0x148   :  { %2240 = vrcp.f32 %v653_v12 }
 0x149   :  { %2242 = vpow2.f32 %v1908_v31  ;;  %v3556_v31 = vld [vmem:[#allocation15_spill] sm:$0xff] }
 0x155   :  { %v2241_v17 = vpop.eup %2240 }
 0x156   :  { %vm761_vm3 = vcmp.gt.f32.partialorder %v2241_v17, 0.5  ;;  %658 = vst.msk [vmem:[#allocation2 + $0x4] sm:$0x1] %vm656_vm2, %v2241_v17  ;;  %v2243_v38 = vpop.eup %2242 }
 0x157   :  { %v2972_v0 = vsel %vm761_vm3, 1.0, %v3552_v21  ;;  %v672_v47 = vadd.f32 1.0, %v2243_v38 }
 0x158   :  { %v2975_v23 = vmul.f32 %v2972_v0, %v796_v29 }
 0x159   :  { %2244 = vrcp.f32 %v672_v47 }
 0x166   :  { %v2245_v63 = vpop.eup %2244 }
 0x167   :  { %v2979_v60 = vsub.f32 1.0, %v2245_v63  ;;  %v2981_v48 = vmul.f32 0.0, %v2245_v63 }
 0x169   :  { %v737_v37 = vmul.f32 %v2861_v32, %v2979_v60  ;;  %v736_v6 = vmul.f32 %v2859_v28, %v2979_v60  ;;  %v739_v2 = vmul.f32 %v2857_v43, %v2979_v60  ;;  %v738_v55 = vmul.f32 %v2855_v18, %v2979_v60 }
 0x16a   :  { %v741_v52 = vmul.f32 %v2887_v61, %v2979_v60  ;;  %v740_v11 = vmul.f32 %v2877_v46, %v2979_v60  ;;  %v743_v13 = vmul.f32 %v2866_v14, %v2979_v60  ;;  %v742_v12 = vmul.f32 %v3555_v10, %v2979_v60 }
 0x16b   :  { %v750_v24 = vadd.f32 %v2981_v48, %v737_v37  ;;  %v749_v58 = vadd.f32 %v2981_v48, %v736_v6  ;;  %v752_v50 = vadd.f32 %v2981_v48, %v739_v2  ;;  %v751_v45 = vadd.f32 %v2981_v48, %v738_v55  ;;  %v3557_v2 = vld [vmem:[#allocation13_spill] sm:$0xff] }
 0x16c   :  { %v754_v57 = vadd.f32 %v2981_v48, %v741_v52  ;;  %v753_v15 = vadd.f32 %v2981_v48, %v740_v11  ;;  %v756_v47 = vadd.f32 %v2981_v48, %v743_v13  ;;  %v755_v55 = vadd.f32 %v2981_v48, %v742_v12 }
 0x16d   :  { %v800_v5 = vadd.f32 %v750_v24, %v2823_v36  ;;  %v799_v20 = vadd.f32 %v749_v58, %v3553_v7  ;;  %v802_v9 = vadd.f32 %v752_v50, %v3554_v16  ;;  %v801_v38 = vadd.f32 %v751_v45, %v3556_v31 }
 0x16e   :  { %v804_v24 = vadd.f32 %v754_v57, %v3557_v2 }
 0x1e7   :  { %v2109_v53 = vpop.f32.mrf.mxu1 }
 0x1e8   :  { %v937_v56 = vadd.f32 %v2109_v53, %v800_v5  ;;  %v3558_v5 = vld [vmem:[#allocation16_spill] sm:$0xff] }
 0x1e9   :  { %v877_v26 = vpop.f32.mrf.mxu1  ;;  %v803_v11 = vadd.f32 %v753_v15, %v3558_v5 }
 0x1ea   :  { %v1923_v41 = vmul.f32 -1.442695, %v937_v56  ;;  %v936_v51 = vadd.f32 %v877_v26, %v799_v20  ;;  %v3559_v20 = vld [vmem:[#allocation17_spill] sm:$0xff] }
 0x1eb   :  { %v2112_v17 = vpop.f32.mrf.mxu1  ;;  %v806_v13 = vadd.f32 %v756_v47, %v3559_v20 }
 0x1ec   :  { %2246 = vpow2.f32 %v1923_v41  ;;  %v1922_v29 = vmul.f32 -1.442695, %v936_v51  ;;  %v939_v27 = vadd.f32 %v2112_v17, %v802_v9  ;;  %v3560_v9 = vld [vmem:[#allocation18_spill] sm:$0xff] }
 0x1ed   :  { %v887_v63 = vpop.f32.mrf.mxu1  ;;  %v805_v17 = vadd.f32 %v755_v55, %v3560_v9 }
 0x1ee   :  { %2248 = vpow2.f32 %v1922_v29  ;;  %v1925_v37 = vmul.f32 -1.442695, %v939_v27  ;;  %v938_v6 = vadd.f32 %v887_v63, %v801_v38  ;;  %v3015_v27 = vpop.permute.xlu1 %1075  ;;  %v3017_v63 = vpop.permute.xlu0 %1103 }
 0x1ef   :  { %v2115_v58 = vpop.f32.mrf.mxu1 }
 0x1f0   :  { %2250 = vpow2.f32 %v1925_v37  ;;  %v1924_v50 = vmul.f32 -1.442695, %v938_v6  ;;  %v941_v52 = vadd.f32 %v2115_v58, %v804_v24 }
 0x1f1   :  { %v897_v53 = vpop.f32.mrf.mxu1 }
 0x1f2   :  { %2252 = vpow2.f32 %v1924_v50  ;;  %v1927_v56 = vmul.f32 -1.442695, %v941_v52  ;;  %v940_v45 = vadd.f32 %v897_v53, %v803_v11  ;;  %v3019_v47 = vpop.permute.xlu1 %1099  ;;  %v3021_v11 = vpop.permute.xlu0 %1091 }
 0x1f3   :  { %v2118_v26 = vpop.f32.mrf.mxu1 }
 0x1f4   :  { %v1926_v41 = vmul.f32 -1.442695, %v940_v45  ;;  %v943_v51 = vadd.f32 %v2118_v26, %v806_v13  ;;  %2254 = vpow2.f32 %v1927_v56  ;;  %v745_v45 = vmul.f32 %v2907_v39, %v2979_v60 }
 0x1f5   :  { %v907_v57 = vpop.f32.mrf.mxu1  ;;  %v744_v26 = vmul.f32 %v2905_v34, %v2979_v60 }
 0x1f6   :  { %v1929_v12 = vmul.f32 -1.442695, %v943_v51  ;;  %v942_v29 = vadd.f32 %v907_v57, %v805_v17  ;;  %2256 = vpow2.f32 %v1926_v41  ;;  %v3023_v56 = vpop.permute.xlu1 %1095  ;;  %v747_v17 = vmul.f32 %v2901_v42, %v2979_v60 }
 0x1f7   :  { %v2121_v52 = vpop.f32.mrf.mxu1 }
 0x1f8   :  { %v1928_v38 = vmul.f32 -1.442695, %v942_v29  ;;  %2258 = vpow2.f32 %v1929_v12  ;;  %v758_v12 = vadd.f32 %v2981_v48, %v745_v45  ;;  %v3032_v29 = vpop.permute.xlu0 %1115  ;;  %v760_v9 = vadd.f32 %v2981_v48, %v747_v17 }
 0x1f9   :  { %v2247_v15 = vpop.eup %2246  ;;  %v917_v41 = vpop.f32.mrf.mxu1 }
 0x1fa   :  { %v969_v37 = vadd.f32 1.0, %v2247_v15  ;;  %2260 = vpow2.f32 %v1928_v38  ;;  %v746_v15 = vmul.f32 %v2897_v4, %v2979_v60  ;;  %v808_v45 = vadd.f32 %v758_v12, %v2869_v1 }
 0x1fb   :  { %v2249_v6 = vpop.eup %2248  ;;  %v992_v5 = vadd.f32 %v917_v41, %v2849_v8 }
 0x1fc   :  { %2262 = vrcp.f32 %v969_v37  ;;  %v968_v24 = vadd.f32 1.0, %v2249_v6  ;;  %v757_v37 = vadd.f32 %v2981_v48, %v744_v26  ;;  %v3037_v6 = vpop.permute.xlu1 %1119  ;;  %v759_v26 = vadd.f32 %v2981_v48, %v746_v15 }
 0x1fd   :  { %v2251_v55 = vpop.eup %2250 }
 0x1fe   :  { %2264 = vrcp.f32 %v968_v24  ;;  %v971_v58 = vadd.f32 1.0, %v2251_v55  ;;  %v2124_v24 = vpop.f32.mrf.mxu1  ;;  %v807_v31 = vadd.f32 %v757_v37, %v2874_v3 }
 0x1ff   :  { %v2253_v50 = vpop.eup %2252 }
 0x200   :  { %2266 = vrcp.f32 %v971_v58  ;;  %v970_v53 = vadd.f32 1.0, %v2253_v50  ;;  %v3561_v50 = vld [vmem:[#allocation14_spill] sm:$0xff]  ;;  %v927_v16 = vpop.f32.mrf.mxu1 }
 0x201   :  { %v2255_v13 = vpop.eup %2254  ;;  %v994_v12 = vadd.f32 %v927_v16, %v2817_v33  ;;  %v3565_v16 = vmov 2  }
 0x202   :  { %2268 = vrcp.f32 %v970_v53  ;;  %v973_v38 = vadd.f32 1.0, %v2255_v13  ;;  %v993_v53 = vadd.f32 %v2121_v52, %v3561_v50  ;;  %v995_v50 = vadd.f32 %v2124_v24, %v2809_v25 }
 0x203   :  { %v2257_v51 = vpop.eup %2256 }
 0x204   :  { %v972_v58 = vadd.f32 1.0, %v2257_v51  ;;  %2270 = vrcp.f32 %v973_v38  ;;  %v3048_v38 = vpop.permute.xlu1 %1111 }
 0x205   :  { %v2259_v57 = vpop.eup %2258 }
 0x206   :  { %v975_v20 = vadd.f32 1.0, %v2259_v57  ;;  %2272 = vrcp.f32 %v972_v58  ;;  %v3046_v57 = vpop.permute.xlu0 %1107  ;;  %v3562_v58 = vld [vmem:[#allocation5_spill] sm:$0xff] }
 0x207   :  { %v2261_v55 = vpop.eup %2260 }
 0x208   :  { %v974_v2 = vadd.f32 1.0, %v2261_v55  ;;  %2274 = vrcp.f32 %v975_v20  ;;  %v2423_v55 = vmov 3  }
 0x209   :  { %v2263_v22 = vpop.eup %2262  ;;  %2192 = vset.pattern.permute.xlu0 %v2423_v55  ;;  %2191 = vset.pattern.permute.xlu1 %v2423_v55 }
 0x20a   :  { %v997_v13 = vmul.f32 %v2263_v22, %v993_v53  ;;  %v810_v22 = vadd.f32 %v760_v9, %v2882_v59  ;;  %1816 = vperm.xlu0 %2192, %v3562_v58   ;;  %1812 = vperm.xlu1 %2191, %v2776_v62   ;;  %v3057_v9 = vpop.permute.xlu1 %1135 }
 0x20b   :  { %v2265_v60 = vpop.eup %2264  ;;  %3564 = vst [vmem:[#allocation20_spill] sm:$0xff] %v3057_v9 }
 0x20c   :  { %v1001_v51 = vadd.f32 %v997_v13, %v808_v45  ;;  %v996_v52 = vmul.f32 %v2265_v60, %v992_v5  ;;  %v809_v5 = vadd.f32 %v759_v26, %v2893_v30  ;;  %v3569_v26 = vld [vmem:[#allocation6_spill] sm:$0xff]  ;;  %v3571_v30 = vld [vmem:[#allocation8_spill] sm:$0xff] }
 0x20d   :  { %v2267_v17 = vpop.eup %2266 }
 0x20e   :  { %2276 = vtanh.f32 %v1001_v51  ;;  %v1000_v41 = vadd.f32 %v996_v52, %v807_v31  ;;  %v999_v48 = vmul.f32 %v2267_v17, %v995_v50  ;;  %v3055_v31 = vpop.permute.xlu0 %1131  ;;  %2193 = vset.pattern.permute.xlu0 %v3565_v16  ;;  %2194 = vset.pattern.permute.xlu1 %v3565_v16  ;;  %v3065_v62 = vpop.permute.xlu1 %1127 }
 0x20f   :  { %v2269_v15 = vpop.eup %2268  ;;  %2278 = vrcp.f32 %v974_v2  ;;  %3563 = vst [vmem:[#allocation11_spill] sm:$0xff] %v3055_v31  ;;  %1441 = vperm.xlu0 %2193, %v3562_v58   ;;  %v3566_v2 = vld [vmem:[#allocation7_spill] sm:$0xff] }
 0x210   :  { %2280 = vtanh.f32 %v1000_v41  ;;  %v1003_v37 = vadd.f32 %v999_v48, %v810_v22  ;;  %v998_v24 = vmul.f32 %v2269_v15, %v994_v12  ;;  %1445 = vperm.xlu1 %2194, %v3566_v2   ;;  %3568 = vst [vmem:[#allocation7_spill] sm:$0xff] %v3065_v62 }
 0x211   :  { %v2271_v50 = vpop.eup %2270 }
 0x212   :  { %2282 = vtanh.f32 %v1003_v37  ;;  %v1002_v20 = vadd.f32 %v998_v24, %v809_v5  ;;  %v3063_v45 = vpop.permute.xlu0 %1123  ;;  %v1009_v60 = vsub.f32 1.0, %v2271_v50  ;;  %v1017_v22 = vmul.f32 %v2271_v50, %v2911_v19  ;;  %v1026_v15 = vpop.permute.xlu1 %1025 }
 0x213   :  { %v2273_v53 = vpop.eup %2272  ;;  %3567 = vst [vmem:[#allocation5_spill] sm:$0xff] %v3063_v45  ;;  %1449 = vperm.xlu0 %2193, %v3569_v26  }
 0x214   :  { %2284 = vtanh.f32 %v1002_v20  ;;  %2195 = vset.pattern.permute.xlu1 %v2423_v55  ;;  %v1008_v41 = vsub.f32 1.0, %v2273_v53  ;;  %v1016_v24 = vmul.f32 %v2273_v53, %v2915_v54 }
 0x215   :  { %v2275_v13 = vpop.eup %2274  ;;  %1820 = vperm.xlu1 %2195, %v3566_v2  }
 0x216   :  { %v1030_v12 = vpop.permute.xlu0 %1029  ;;  %v1011_v58 = vsub.f32 1.0, %v2275_v13  ;;  %v1019_v19 = vmul.f32 %v2275_v13, %v2917_v35 }
 0x217   :  { %2197 = vset.pattern.permute.xlu0 %v2423_v55 }
 0x218   :  { %1845 = vperm.xlu0 %2197, %v3571_v30  }
 0x219   :  { %1824 = vperm.xlu1 %2195, %v3569_v26   ;;  %v1034_v26 = vpop.permute.xlu1 %1033 }
 0x21b   :  { %v2277_v51 = vpop.eup %2276 }
 0x21c   :  { %v2279_v52 = vpop.eup %2278  ;;  %v1013_v17 = vmul.f32 %v2277_v51, %v1009_v60 }
 0x21d   :  { %v2281_v48 = vpop.eup %2280  ;;  %v1010_v50 = vsub.f32 1.0, %v2279_v52  ;;  %2196 = vset.pattern.permute.xlu1 %v3565_v16 }
 0x21e   :  { %v3070_v37 = vadd.f32 %v1017_v22, %v1013_v17  ;;  %v1012_v5 = vmul.f32 %v2281_v48, %v1008_v41  ;;  %v1018_v17 = vmul.f32 %v2279_v52, %v2924_v49  ;;  %v1038_v41 = vpop.permute.xlu0 %1037  ;;  %1470 = vperm.xlu1 %2196, %v3571_v30  }
 0x21f   :  { %v2283_v20 = vpop.eup %2282 }
 0x220   :  { %3570 = vst [vmem:[#allocation6_spill] sm:$0xff] %v3070_v37  ;;  %v3075_v2 = vadd.f32 %v1016_v24, %v1012_v5  ;;  %v1015_v60 = vmul.f32 %v2283_v20, %v1011_v58  ;;  %v1041_v22 = vmul.f32 %v1030_v12, %v3070_v37  ;;  %v3104_v24 = vld [vmem:[%s3459_s2 + $0x8] sm:$0xff]  ;;  %v3111_v20 = vld [vmem:[%s3459_s2 + $0x10] sm:$0xff] }
 0x221   :  { %v2285_v51 = vpop.eup %2284  ;;  %3575 = vst [vmem:[#allocation27_spill] sm:$0xff] %v3104_v24  ;;  %3576 = vst [vmem:[#allocation28_spill] sm:$0xff] %v3111_v20 }
 0x222   :  { %3572 = vst [vmem:[#allocation8_spill] sm:$0xff] %v3075_v2  ;;  %v1040_v54 = vmul.f32 %v1026_v15, %v3075_v2  ;;  %v3081_v53 = vadd.f32 %v1019_v19, %v1015_v60  ;;  %v1014_v55 = vmul.f32 %v2285_v51, %v1010_v50  ;;  %v1045_v49 = vsel %vm626_vm1, %v1041_v22, 0.0  ;;  %v3120_v19 = vld [vmem:[%s3459_s2 + $0x20] sm:$0xff]  ;;  %v1059_v51 = vpop.permute.xlu1 %1058  ;;  %v3127_v22 = vld [vmem:[%s3459_s2 + $0x28] sm:$0xff] }
 0x223   :  { %3577 = vst [vmem:[#allocation29_spill] sm:$0xff] %v3120_v19  ;;  %3578 = vst [vmem:[#allocation30_spill] sm:$0xff] %v3127_v22 }
 0x224   :  { %3573 = vst [vmem:[#allocation25_spill] sm:$0xff] %v3081_v53  ;;  %v1044_v48 = vsel %vm626_vm1, %v1040_v54, 0.0  ;;  %2125 = vmatprep.subr.mxu0 %v3081_v53  ;;  %v3086_v35 = vadd.f32 %v1018_v17, %v1014_v55  ;;  %v1043_v13 = vmul.f32 %v1038_v41, %v3081_v53  ;;  %v1064_v54 = vrot.slane %v1059_v51, %v2951_v40  ;;  %v3135_v55 = vld [vmem:[%s3459_s2 + $0x30] sm:$0xff] }
 0x225   :  { %2126 = vmatpush3.msra.mxu0 %v3081_v53  ;;  %v1046_v12 = vadd.f32 %v1045_v49, %v1044_v48  ;;  %3579 = vst [vmem:[#allocation31_spill] sm:$0xff] %v3135_v55  ;;  %v3149_v49 = vld [vmem:[%s3459_s2 + $0x40] sm:$0xff] }
 0x226   :  { %3574 = vst [vmem:[#allocation26_spill] sm:$0xff] %v3086_v35  ;;  %v1042_v52 = vmul.f32 %v1034_v26, %v3086_v35  ;;  %2127 = vmatprep.subr.mxu0 %v3086_v35  ;;  %v1049_v30 = vsel %vm626_vm1, %v1043_v13, 0.0  ;;  %v3142_v26 = vld [vmem:[%s3459_s2 + $0x38] sm:$0xff]  ;;  %3581 = vst [vmem:[#allocation33_spill] sm:$0xff] %v3149_v49 }
 0x227   :  { %2128 = vmatpush3.msra.mxu0 %v3086_v35  ;;  %3580 = vst [vmem:[#allocation32_spill] sm:$0xff] %v3142_v26  ;;  %v3238_v35 = vmul.f32 %v2972_v0, %v2907_v39 }
 0x228   :  { %v1047_v16 = vsel %vm626_vm1, %v1042_v52, 0.0  ;;  %2129 = vmatprep.subr.mxu0 %v3070_v37  ;;  %v3157_v52 = vld [vmem:[%s3459_s2 + $0x48] sm:$0xff] }
 0x229   :  { %v1048_v15 = vadd.f32 %v1047_v16, %v1046_v12  ;;  %2130 = vmatpush3.msra.mxu0 %v3070_v37  ;;  %3582 = vst [vmem:[#allocation34_spill] sm:$0xff] %v3157_v52  ;;  %v3164_v12 = vld [vmem:[%s3459_s2 + $0x50] sm:$0xff]  ;;  %v3171_v16 = vld [vmem:[%s3459_s2 + $0x58] sm:$0xff]  ;;  %3587 = vst [vmem:[#allocation39_spill] sm:$0xff] %v3238_v35 }
 0x22a   :  { %2131 = vmatprep.subr.mxu0 %v3075_v2  ;;  %3583 = vst [vmem:[#allocation35_spill] sm:$0xff] %v3164_v12  ;;  %3584 = vst [vmem:[#allocation36_spill] sm:$0xff] %v3171_v16 }
 0x22b   :  { %v1050_v5 = vadd.f32 %v1049_v30, %v1048_v15  ;;  %2132 = vmatpush3.msra.mxu0 %v3075_v2 }
 0x22c   :  { %2134 = vmatmul.mubr.msk.f32.vlgmr.msra.gmra.mxu0 %vm159_vm0, %v3104_v24  ;;  %v3234_v24 = vmul.f32 %v2972_v0, %v2905_v34 }
 0x22d   :  { %v1051_v58 = vrot.slane %v1050_v5, 4  ;;  %2136 = vmatprep.mubr.msk.f32.mxu0 %vm159_vm0, %v3111_v20  ;;  %v3230_v20 = vmul.f32 %v2972_v0, %v2901_v42 }
 0x22e   :  { %3586 = vst [vmem:[#allocation38_spill] sm:$0xff] %v3234_v24 }
 0x22f   :  { %v1052_v60 = vadd.f32 %v1051_v58, %v1050_v5  ;;  %v1203_v5 = vpop.permute.xlu0 %1202 }
 0x230   :  { %2137 = vmatmul.mubr.msk.f32.gmra.mxu0 %vm159_vm0, %v2673_v44  ;;  %v1208_v58 = vrot.slane %v1203_v5, %v2951_v40 }
 0x231   :  { %2139 = vmatprep.mubr.msk.f32.mxu0 %vm159_vm0, %v3120_v19  ;;  %v1053_v50 = vrot.slane %v1052_v60, 2  ;;  %v3226_v19 = vmul.f32 %v2972_v0, %v2897_v4 }
 0x233   :  { %v1054_v17 = vadd.f32 %v1053_v50, %v1052_v60  ;;  %v1488_v50 = vpop.permute.xlu1 %1487 }
 0x234   :  { %2140 = vmatmul.mubr.msk.f32.gmra.mxu0 %vm159_vm0, %v3127_v22 }
 0x235   :  { %v1055_v44 = vrot.slane %v1054_v17, 1  ;;  %2142 = vmatprep.mubr.msk.f32.mxu0 %vm159_vm0, %v3135_v55 }
 0x237   :  { %v1056_v41 = vadd.f32 %v1055_v44, %v1054_v17  ;;  %v1493_v44 = vrot.slane %v1488_v50, %v2951_v40  ;;  %v3194_v50 = vmul.f32 %v2972_v0, %v2861_v32 }
 0x238   :  { %2143 = vmatmul.mubr.msk.f32.gmra.mxu0 %vm159_vm0, %v3142_v26 }
 0x239   :  { %v1065_v48 = vadd.f32 %v1064_v54, %v1056_v41  ;;  %2145 = vmatprep.mubr.msk.f32.mxu0 %vm159_vm0, %v3149_v49 }
 0x23b   :  { %v1930_v13 = vmul.f32 -1.442695, %v1065_v48  ;;  %1072 = vst.msk [vmem:[#allocation2 + $0x1] sm:$0x1] %vm656_vm2, %v1065_v48 }
 0x23c   :  { %2146 = vmatmul.mubr.msk.f32.gmra.mxu0 %vm159_vm0, %v3157_v52 }
 0x23d   :  { %2286 = vpow2.f32 %v1930_v13  ;;  %2148 = vmatprep.mubr.msk.f32.mxu0 %vm159_vm0, %v3164_v12  ;;  %v1504_v13 = vpop.permute.xlu0 %1503 }
 0x240   :  { %2149 = vmatmul.mubr.msk.f32.gmra.mxu0 %vm159_vm0, %v3171_v16 }
 0x24a   :  { %v2287_v15 = vpop.eup %2286 }
 0x24b   :  { %v1069_v30 = vadd.f32 1.0, %v2287_v15  ;;  %v1508_v15 = vpop.permute.xlu1 %1507 }
 0x24d   :  { %2288 = vrcp.f32 %v1069_v30  ;;  %v1516_v30 = vpop.permute.xlu0 %1515 }
 0x24f   :  { %v1512_v16 = vpop.permute.xlu1 %1511 }
 0x251   :  { %v1524_v52 = vpop.permute.xlu0 %1523 }
 0x253   :  { %v1520_v49 = vpop.permute.xlu1 %1519 }
 0x25a   :  { %v2289_v60 = vpop.eup %2288 }
 0x25b   :  { %1073 = vst.msk [vmem:[#allocation2 + $0x5] sm:$0x1] %vm656_vm2, %v2289_v60  ;;  %vm1174_vm4 = vcmp.gt.f32.partialorder %v2289_v60, 0.5  ;;  %v3190_v60 = vmul.f32 %v2972_v0, %v2859_v28  ;;  %v3210_v28 = vmul.f32 %v2972_v0, %v2887_v61 }
 0x25c   :  { %v1932_v51 = vsel %vm1174_vm4, 1.0, %v3552_v21  ;;  %v3182_v21 = vmul.f32 %v2972_v0, %v2857_v43  ;;  %v3202_v43 = vmul.f32 %v2972_v0, %v2866_v14 }
 0x25d   :  { %v1209_v17 = vmul.f32 %v1932_v51, %v1208_v58  ;;  %v3186_v58 = vmul.f32 %v2972_v0, %v2855_v18  ;;  %v3206_v18 = vmul.f32 %v2972_v0, %v2877_v46  ;;  %v1177_v32 = vmul.f32 %v1932_v51, %v3021_v11 }
 0x25e   :  { %v1182_v14 = vmul.f32 %v1932_v51, %v3048_v38  ;;  %v1184_v46 = vmul.f32 %v1932_v51, %v3037_v6  ;;  %v1186_v61 = vmul.f32 %v1932_v51, %v3065_v62  ;;  %v1185_v26 = vmul.f32 %v1932_v51, %v3063_v45 }
 0x25f   :  { %v1210_v54 = vadd.f32 %v1209_v17, %v2975_v23  ;;  %v1532_v17 = vpop.permute.xlu0 %1531  ;;  %v1188_v55 = vmul.f32 %v1932_v51, %v3057_v9  ;;  %v1187_v22 = vmul.f32 %v1932_v51, %v3055_v31  ;;  %v1189_v53 = vadd.f32 %v1177_v32, %v3190_v60 }
 0x260   :  { %v1194_v37 = vadd.f32 %v1182_v14, %v3210_v28  ;;  %v1196_v33 = vadd.f32 %v1184_v46, %v3202_v43  ;;  %v1197_v32 = vadd.f32 %v1185_v26, %v3234_v24 }
 0x261   :  { %v1494_v41 = vadd.f32 %v1493_v44, %v1210_v54  ;;  %v1528_v44 = vpop.permute.xlu1 %1527  ;;  %v1178_v54 = vmul.f32 %v1932_v51, %v3023_v56 }
 0x263   :  { %v1954_v48 = vmul.f32 -1.442695, %v1494_v41  ;;  %v1179_v41 = vmul.f32 %v1932_v51, %v3019_v47  ;;  %v1540_v59 = vpop.permute.xlu0 %1539 }
 0x265   :  { %2290 = vpow2.f32 %v1954_v48  ;;  %v1181_v48 = vmul.f32 %v1932_v51, %v3046_v57  ;;  %v1191_v4 = vadd.f32 %v1179_v41, %v3186_v58  ;;  %v1536_v25 = vpop.permute.xlu1 %1535 }
 0x267   :  { %v1193_v42 = vadd.f32 %v1181_v48, %v3206_v18 }
 0x272   :  { %v2291_v5 = vpop.eup %2290 }
 0x273   :  { %v1498_v12 = vadd.f32 1.0, %v2291_v5  ;;  %v1183_v5 = vmul.f32 %v1932_v51, %v3032_v29 }
 0x275   :  { %2292 = vrcp.f32 %v1498_v12  ;;  %v3198_v12 = vmul.f32 %v2972_v0, %v3555_v10  ;;  %v1180_v10 = vmul.f32 %v1932_v51, %v3017_v63  ;;  %v1190_v51 = vadd.f32 %v1178_v54, %v3194_v50 }
 0x276   :  { %v1198_v0 = vadd.f32 %v1186_v61, %v3238_v35  ;;  %v1200_v54 = vadd.f32 %v1188_v55, %v3230_v20 }
 0x277   :  { %3585 = vst [vmem:[#allocation37_spill] sm:$0xff] %v3198_v12  ;;  %v1192_v2 = vadd.f32 %v1180_v10, %v3182_v21  ;;  %v1195_v34 = vadd.f32 %v1183_v5, %v3198_v12  ;;  %v1199_v10 = vadd.f32 %v1187_v22, %v3226_v19 }
 0x282   :  { %v2293_v39 = vpop.eup %2292 }
 0x283   :  { %v1501_v41 = vsub.f32 1.0, %v2293_v39  ;;  %v1562_v3 = vmul.f32 %v2293_v39, %v1189_v53  ;;  %v1563_v14 = vmul.f32 %v2293_v39, %v1190_v51  ;;  %v1565_v8 = vmul.f32 %v2293_v39, %v1192_v2  ;;  %v1548_v2 = vpop.permute.xlu0 %1547 }
 0x284   :  { %v1564_v48 = vmul.f32 %v2293_v39, %v1191_v4  ;;  %v1567_v1 = vmul.f32 %v2293_v39, %v1194_v37  ;;  %v1566_v46 = vmul.f32 %v2293_v39, %v1193_v42  ;;  %v1569_v31 = vmul.f32 %v2293_v39, %v1196_v33  ;;  %v1544_v37 = vpop.permute.xlu1 %1543 }
 0x285   :  { %v1550_v5 = vmul.f32 %v1504_v13, %v1501_v41  ;;  %v1551_v9 = vmul.f32 %v1508_v15, %v1501_v41  ;;  %v1553_v45 = vmul.f32 %v1516_v30, %v1501_v41  ;;  %v1552_v62 = vmul.f32 %v1512_v16, %v1501_v41 }
 0x286   :  { %v1555_v12 = vmul.f32 %v1524_v52, %v1501_v41  ;;  %v1554_v61 = vmul.f32 %v1520_v49, %v1501_v41  ;;  %v1557_v35 = vmul.f32 %v1532_v17, %v1501_v41  ;;  %v1556_v26 = vmul.f32 %v1528_v44, %v1501_v41 }
 0x287   :  { %v3252_v24 = vadd.f32 %v1562_v3, %v1550_v5  ;;  %v3254_v55 = vadd.f32 %v1563_v14, %v1551_v9  ;;  %v3256_v22 = vadd.f32 %v1565_v8, %v1553_v45  ;;  %v3258_v53 = vadd.f32 %v1564_v48, %v1552_v62 }
 0x288   :  { %v3260_v51 = vadd.f32 %v1567_v1, %v1555_v12  ;;  %v3262_v33 = vadd.f32 %v1566_v46, %v1554_v61  ;;  %v3264_v13 = vadd.f32 %v1569_v31, %v1557_v35  ;;  %v1568_v52 = vmul.f32 %v2293_v39, %v1195_v34 }
 0x289   :  { %v1559_v49 = vmul.f32 %v1540_v59, %v1501_v41  ;;  %v1571_v16 = vmul.f32 %v2293_v39, %v1198_v0  ;;  %v1558_v15 = vmul.f32 %v1536_v25, %v1501_v41  ;;  %v1570_v3 = vmul.f32 %v2293_v39, %v1197_v32 }
 0x28a   :  { %v3266_v30 = vadd.f32 %v1568_v52, %v1556_v26  ;;  %v1561_v9 = vmul.f32 %v1548_v2, %v1501_v41  ;;  %v1573_v8 = vmul.f32 %v2293_v39, %v1200_v54  ;;  %v1560_v45 = vmul.f32 %v1544_v37, %v1501_v41  ;;  %v3588_v52 = vld [vmem:[#allocation12_spill] sm:$0xff] }
 0x28b   :  { %v3268_v62 = vadd.f32 %v1571_v16, %v1559_v49  ;;  %v3270_v17 = vadd.f32 %v1570_v3, %v1558_v15  ;;  %v1572_v1 = vmul.f32 %v2293_v39, %v1199_v10  ;;  %v1081_v59 = vrot.slane %v3015_v27, %v2951_v40 }
 0x28c   :  { %v3272_v12 = vadd.f32 %v1573_v8, %v1561_v9  ;;  %v3589_v9 = vld [vmem:[#allocation15_spill] sm:$0xff] }
 0x28d   :  { %v3274_v44 = vadd.f32 %v1572_v1, %v1560_v45  ;;  %v1082_v25 = vadd.f32 %v1081_v59, %v2975_v23 }
 0x28f   :  { %v1931_v31 = vmul.f32 -1.442695, %v1082_v25 }
 0x291   :  { %2294 = vpow2.f32 %v1931_v31 }
 0x29e   :  { %v2295_v35 = vpop.eup %2294 }
 0x29f   :  { %v1086_v4 = vadd.f32 1.0, %v2295_v35  ;;  %v3591_v35 = vld [vmem:[#allocation13_spill] sm:$0xff] }
 0x2a1   :  { %2296 = vrcp.f32 %v1086_v4 }
 0x2ae   :  { %v3279_v42 = vpop.eup %2296 }
 0x2af   :  { %v3282_v34 = vsub.f32 1.0, %v3279_v42  ;;  %v1151_v27 = vmul.f32 %v3279_v42, %v3194_v50  ;;  %v1150_v32 = vmul.f32 %v3279_v42, %v3190_v60  ;;  %v1153_v10 = vmul.f32 %v3279_v42, %v3182_v21 }
 0x2b0   :  { %v1155_v21 = vmul.f32 %v3279_v42, %v3210_v28  ;;  %v1157_v28 = vmul.f32 %v3279_v42, %v3202_v43 }
 0x2b1   :  { %v1139_v39 = vmul.f32 %v3023_v56, %v3282_v34  ;;  %v1138_v0 = vmul.f32 %v3021_v11, %v3282_v34  ;;  %v1141_v23 = vmul.f32 %v3017_v63, %v3282_v34  ;;  %v1140_v41 = vmul.f32 %v3019_v47, %v3282_v34 }
 0x2b2   :  { %v1152_v11 = vmul.f32 %v3279_v42, %v3186_v58  ;;  %v1143_v50 = vmul.f32 %v3048_v38, %v3282_v34  ;;  %v1142_v60 = vmul.f32 %v3046_v57, %v3282_v34  ;;  %v1145_v61 = vmul.f32 %v3037_v6, %v3282_v34 }
 0x2b3   :  { %v1163_v54 = vadd.f32 %v1151_v27, %v1139_v39  ;;  %v1162_v56 = vadd.f32 %v1150_v32, %v1138_v0  ;;  %v1165_v14 = vadd.f32 %v1153_v10, %v1141_v23  ;;  %v1154_v58 = vmul.f32 %v3279_v42, %v3206_v18  ;;  %v3590_v18 = vld [vmem:[#allocation37_spill] sm:$0xff]  ;;  %v3592_v27 = vld [vmem:[#allocation16_spill] sm:$0xff] }
 0x2b4   :  { %v1164_v46 = vadd.f32 %v1152_v11, %v1140_v41  ;;  %v1167_v26 = vadd.f32 %v1155_v21, %v1143_v50  ;;  %v1144_v49 = vmul.f32 %v3032_v29, %v3282_v34  ;;  %v1156_v45 = vmul.f32 %v3279_v42, %v3590_v18  ;;  %v3593_v41 = vld [vmem:[#allocation17_spill] sm:$0xff]  ;;  %v3597_v18 = vld [vmem:[#allocation39_spill] sm:$0xff] }
 0x2b5   :  { %v1212_v63 = vadd.f32 %v1163_v54, %v2823_v36  ;;  %v1211_v47 = vadd.f32 %v1162_v56, %v3553_v7  ;;  %v1214_v57 = vadd.f32 %v1165_v14, %v3588_v52  ;;  %v1166_v16 = vadd.f32 %v1154_v58, %v1142_v60 }
 0x2b6   :  { %v1213_v8 = vadd.f32 %v1164_v46, %v3589_v9  ;;  %v1169_v1 = vadd.f32 %v1157_v28, %v1145_v61  ;;  %v1216_v29 = vadd.f32 %v1167_v26, %v3591_v35  ;;  %v1168_v4 = vadd.f32 %v1156_v45, %v1144_v49  ;;  %v3595_v28 = vld [vmem:[#allocation7_spill] sm:$0xff] }
 0x2b7   :  { %v1215_v23 = vadd.f32 %v1166_v16, %v3592_v27  ;;  %v1147_v16 = vmul.f32 %v3595_v28, %v3282_v34  ;;  %v1159_v45 = vmul.f32 %v3279_v42, %v3597_v18 }
 0x2b8   :  { %v1218_v56 = vadd.f32 %v1169_v1, %v3593_v41 }
 0x2ec   :  { %v2135_v48 = vpop.f32.mrf.mxu0 }
 0x2ed   :  { %v1349_v5 = vadd.f32 %v2135_v48, %v1212_v63  ;;  %v3594_v63 = vld [vmem:[#allocation18_spill] sm:$0xff] }
 0x2ee   :  { %v1289_v38 = vpop.f32.mrf.mxu0  ;;  %v1217_v60 = vadd.f32 %v1168_v4, %v3594_v63 }
 0x2ef   :  { %v1946_v2 = vmul.f32 -1.442695, %v1349_v5  ;;  %v1348_v37 = vadd.f32 %v1289_v38, %v1211_v47 }
 0x2f0   :  { %v2138_v15 = vpop.f32.mrf.mxu0 }
 0x2f1   :  { %2298 = vpow2.f32 %v1946_v2  ;;  %v1945_v3 = vmul.f32 -1.442695, %v1348_v37  ;;  %v1351_v6 = vadd.f32 %v2138_v15, %v1214_v57 }
 0x2f2   :  { %v1299_v59 = vpop.f32.mrf.mxu0 }
 0x2f3   :  { %2300 = vpow2.f32 %v1945_v3  ;;  %v1948_v25 = vmul.f32 -1.442695, %v1351_v6  ;;  %v1350_v31 = vadd.f32 %v1299_v59, %v1213_v8  ;;  %v3596_v3 = vld [vmem:[#allocation5_spill] sm:$0xff]  ;;  %v3598_v59 = vld [vmem:[#allocation20_spill] sm:$0xff] }
 0x2f4   :  { %v2141_v39 = vpop.f32.mrf.mxu0  ;;  %v1146_v6 = vmul.f32 %v3596_v3, %v3282_v34 }
 0x2f5   :  { %2302 = vpow2.f32 %v1948_v25  ;;  %v1947_v43 = vmul.f32 -1.442695, %v1350_v31  ;;  %v1353_v0 = vadd.f32 %v2141_v39, %v1216_v29  ;;  %v1149_v25 = vmul.f32 %v3598_v59, %v3282_v34  ;;  %v3599_v31 = vld [vmem:[#allocation38_spill] sm:$0xff]  ;;  %v3608_v59 = vld [vmem:[#allocation24_spill] sm:$0xff] }
 0x2f6   :  { %v1309_v32 = vpop.f32.mrf.mxu0  ;;  %v1158_v29 = vmul.f32 %v3279_v42, %v3599_v31  ;;  %v1171_v39 = vadd.f32 %v1159_v45, %v1147_v16  ;;  %v3605_v16 = vld [vmem:[#allocation9_spill] sm:$0xff]  ;;  %v3607_v45 = vld [vmem:[#allocation10_spill] sm:$0xff] }
 0x2f7   :  { %2304 = vpow2.f32 %v1947_v43  ;;  %v1950_v54 = vmul.f32 -1.442695, %v1353_v0  ;;  %v1352_v10 = vadd.f32 %v1309_v32, %v1215_v23  ;;  %v3600_v0 = vld [vmem:[#allocation11_spill] sm:$0xff]  ;;  %v1161_v32 = vmul.f32 %v3279_v42, %v3230_v20 }
 0x2f8   :  { %v2144_v14 = vpop.f32.mrf.mxu0  ;;  %v1148_v23 = vmul.f32 %v3600_v0, %v3282_v34  ;;  %v3603_v34 = vld [vmem:[#allocation19_spill] sm:$0xff]  ;;  %v3348_v0 = vpop.permute.xlu0 %1816 }
 0x2f9   :  { %v1949_v11 = vmul.f32 -1.442695, %v1352_v10  ;;  %v1355_v50 = vadd.f32 %v2144_v14, %v1218_v56  ;;  %2306 = vpow2.f32 %v1950_v54  ;;  %v1170_v54 = vadd.f32 %v1158_v29, %v1146_v6 }
 0x2fa   :  { %v1319_v48 = vpop.f32.mrf.mxu0 }
 0x2fb   :  { %v1952_v46 = vmul.f32 -1.442695, %v1355_v50  ;;  %v1354_v21 = vadd.f32 %v1319_v48, %v1217_v60  ;;  %2308 = vpow2.f32 %v1949_v11  ;;  %v3601_v11 = vld [vmem:[#allocation14_spill] sm:$0xff]  ;;  %v1160_v48 = vmul.f32 %v3279_v42, %v3226_v19  ;;  %v3606_v42 = vld [vmem:[#allocation23_spill] sm:$0xff] }
 0x2fc   :  { %v2147_v57 = vpop.f32.mrf.mxu0 }
 0x2fd   :  { %v1951_v5 = vmul.f32 -1.442695, %v1354_v21  ;;  %2310 = vpow2.f32 %v1952_v46  ;;  %v1405_v50 = vadd.f32 %v2147_v57, %v3601_v11  ;;  %v1173_v46 = vadd.f32 %v1161_v32, %v1149_v25 }
 0x2fe   :  { %v2299_v47 = vpop.eup %2298  ;;  %v1329_v8 = vpop.f32.mrf.mxu0  ;;  %v1172_v20 = vadd.f32 %v1160_v48, %v1148_v23 }
 0x2ff   :  { %v1381_v61 = vadd.f32 1.0, %v2299_v47  ;;  %2312 = vpow2.f32 %v1951_v5  ;;  %v3602_v5 = vld [vmem:[#allocation21_spill] sm:$0xff]  ;;  %v1222_v3 = vadd.f32 %v1173_v46, %v3606_v42 }
 0x300   :  { %v2301_v58 = vpop.eup %2300  ;;  %v2150_v10 = vpop.f32.mrf.mxu0  ;;  %v1220_v47 = vadd.f32 %v1171_v39, %v3602_v5  ;;  %v1221_v25 = vadd.f32 %v1172_v20, %v3608_v59 }
 0x301   :  { %2314 = vrcp.f32 %v1381_v61  ;;  %v1380_v38 = vadd.f32 1.0, %v2301_v58  ;;  %v1404_v58 = vadd.f32 %v1329_v8, %v3603_v34  ;;  %v1438_v39 = vpop.permute.xlu1 %1437 }
 0x302   :  { %v2303_v26 = vpop.eup %2302 }
 0x303   :  { %2316 = vrcp.f32 %v1380_v38  ;;  %v1383_v2 = vadd.f32 1.0, %v2303_v26  ;;  %v3604_v26 = vld [vmem:[#allocation22_spill] sm:$0xff] }
 0x304   :  { %v2305_v37 = vpop.eup %2304 }
 0x305   :  { %2318 = vrcp.f32 %v1383_v2  ;;  %v1382_v49 = vadd.f32 1.0, %v2305_v37  ;;  %v1219_v2 = vadd.f32 %v1170_v54, %v3604_v26  ;;  %v3351_v46 = vpop.permute.xlu1 %1812 }
 0x306   :  { %v2307_v15 = vpop.eup %2306 }
 0x307   :  { %2320 = vrcp.f32 %v1382_v49  ;;  %v1385_v43 = vadd.f32 1.0, %v2307_v15  ;;  %v1339_v49 = vpop.f32.mrf.mxu0  ;;  %v1407_v15 = vadd.f32 %v2150_v10, %v3605_v16 }
 0x308   :  { %v2309_v1 = vpop.eup %2308  ;;  %v1406_v8 = vadd.f32 %v1339_v49, %v3607_v45 }
 0x309   :  { %v1384_v14 = vadd.f32 1.0, %v2309_v1  ;;  %2322 = vrcp.f32 %v1385_v43 }
 0x30a   :  { %v2311_v4 = vpop.eup %2310 }
 0x30b   :  { %v1387_v21 = vadd.f32 1.0, %v2311_v4  ;;  %2324 = vrcp.f32 %v1384_v14 }
 0x30c   :  { %v2313_v56 = vpop.eup %2312 }
 0x30d   :  { %v1386_v37 = vadd.f32 1.0, %v2313_v56  ;;  %2326 = vrcp.f32 %v1387_v21 }
 0x30e   :  { %v2315_v60 = vpop.eup %2314 }
 0x30f   :  { %v1409_v61 = vmul.f32 %v2315_v60, %v1405_v50  ;;  %v3609_v60 = vld [vmem:[#allocation6_spill] sm:$0xff] }
 0x310   :  { %v2317_v38 = vpop.eup %2316 }
 0x311   :  { %v1413_v57 = vadd.f32 %v1409_v61, %v1220_v47  ;;  %v1408_v28 = vmul.f32 %v2317_v38, %v1404_v58  ;;  %v1442_v47 = vpop.permute.xlu0 %1441  ;;  %v3610_v58 = vld [vmem:[#allocation8_spill] sm:$0xff] }
 0x312   :  { %v2319_v19 = vpop.eup %2318 }
 0x313   :  { %2328 = vtanh.f32 %v1413_v57  ;;  %v1412_v6 = vadd.f32 %v1408_v28, %v1219_v2  ;;  %v1411_v18 = vmul.f32 %v2319_v19, %v1407_v15  ;;  %v3611_v28 = vld [vmem:[#allocation25_spill] sm:$0xff] }
 0x314   :  { %v2321_v1 = vpop.eup %2320  ;;  %2330 = vrcp.f32 %v1386_v37 }
 0x315   :  { %2332 = vtanh.f32 %v1412_v6  ;;  %v1415_v31 = vadd.f32 %v1411_v18, %v1222_v3  ;;  %v1410_v29 = vmul.f32 %v2321_v1, %v1406_v8  ;;  %v3612_v6 = vld [vmem:[#allocation26_spill] sm:$0xff] }
 0x316   :  { %v2323_v43 = vpop.eup %2322 }
 0x317   :  { %2334 = vtanh.f32 %v1415_v31  ;;  %v1414_v4 = vadd.f32 %v1410_v29, %v1221_v25  ;;  %v1421_v54 = vsub.f32 1.0, %v2323_v43  ;;  %v1429_v48 = vmul.f32 %v2323_v43, %v3609_v60  ;;  %v1446_v31 = vpop.permute.xlu1 %1445 }
 0x318   :  { %v2325_v23 = vpop.eup %2324 }
 0x319   :  { %2336 = vtanh.f32 %v1414_v4  ;;  %v1420_v14 = vsub.f32 1.0, %v2325_v23  ;;  %v1428_v38 = vmul.f32 %v2325_v23, %v3610_v58  ;;  %v1450_v4 = vpop.permute.xlu0 %1449  ;;  %v3614_v58 = vld [vmem:[#allocation28_spill] sm:$0xff] }
 0x31a   :  { %v2327_v32 = vpop.eup %2326 }
 0x31b   :  { %v1423_v2 = vsub.f32 1.0, %v2327_v32  ;;  %v1431_v15 = vmul.f32 %v2327_v32, %v3611_v28 }
 0x320   :  { %v2329_v10 = vpop.eup %2328 }
 0x321   :  { %v2331_v56 = vpop.eup %2330  ;;  %v1425_v50 = vmul.f32 %v2329_v10, %v1421_v54  ;;  %v3373_v10 = vpop.permute.xlu1 %1820 }
 0x322   :  { %v2333_v21 = vpop.eup %2332  ;;  %v1422_v19 = vsub.f32 1.0, %v2331_v56  ;;  %v1430_v18 = vmul.f32 %v2331_v56, %v3612_v6 }
 0x323   :  { %v1424_v61 = vmul.f32 %v2333_v21, %v1420_v14  ;;  %v3354_v20 = vadd.f32 %v1429_v48, %v1425_v50  ;;  %v3613_v21 = vld [vmem:[#allocation27_spill] sm:$0xff] }
 0x324   :  { %v2335_v37 = vpop.eup %2334 }
 0x325   :  { %v3356_v49 = vadd.f32 %v1428_v38, %v1424_v61  ;;  %v1427_v57 = vmul.f32 %v2335_v37, %v1423_v2  ;;  %v1453_v1 = vmul.f32 %v1442_v47, %v3354_v20  ;;  %v3384_v47 = vpop.permute.xlu1 %1824  ;;  %v2396_v2 = vld [vmem:[%s3459_s2 + $0x18] sm:$0xff]  ;;  %v3615_v37 = vld [vmem:[#allocation29_spill] sm:$0xff]  ;;  %s2424_s2 = smov [#allocation2]  }
 0x326   :  { %v2337_v3 = vpop.eup %2336  ;;  %s1867_s20 = sshll.u32 %s2424_s2, 4  ;;  %s1868_s20 = int_to_ptr.vmem [resolvable:$true] %s1867_s20 }
 0x327   :  { %v1452_v8 = vmul.f32 %v1438_v39, %v3356_v49  ;;  %v3362_v25 = vadd.f32 %v1431_v15, %v1427_v57  ;;  %v1426_v29 = vmul.f32 %v2337_v3, %v1422_v19  ;;  %v1457_v32 = vsel %vm626_vm1, %v1453_v1, 0.0  ;;  %v3616_v19 = vld [vmem:[#allocation30_spill] sm:$0xff]  ;;  %v3618_v1 = vld [vmem:[#allocation32_spill] sm:$0xff]  ;;  %s2397_s21 = scalar_lea.vmem %s1868_s20, 128  ;;  %p2402_p1 = scmp.lt.s32.totalorder %s1868_s20, %s1868_s20 }
 0x328   :  { %p2398_p0 = scmp.ne.s32.totalorder %s1868_s20, %s2397_s21  ;;  %p2403_p2 = scmp.lt.s32.totalorder %s2397_s21, %s2397_s21 }
 0x329   :  { %v1456_v43 = vsel %vm626_vm1, %v1452_v8, 0.0  ;;  %2151 = vmatprep.subr.mxu1 %v3362_v25  ;;  %v3366_v23 = vadd.f32 %v1430_v18, %v1426_v29  ;;  %v1455_v54 = vmul.f32 %v1450_v4, %v3362_v25  ;;  %v1471_v28 = vpop.permute.xlu1 %1470  ;;  %v3617_v18 = vld [vmem:[#allocation31_spill] sm:$0xff]  ;;  %v3619_v29 = vld [vmem:[#allocation33_spill] sm:$0xff] }
 0x32a   :  { %2152 = vmatpush3.msra.mxu1 %v3362_v25  ;;  %v1458_v56 = vadd.f32 %v1457_v32, %v1456_v43  ;;  %v1476_v6 = vrot.slane %v1471_v28, %v2951_v40  ;;  %v3620_v43 = vld [vmem:[#allocation34_spill] sm:$0xff]  ;;  %v3621_v32 = vld [vmem:[#allocation35_spill] sm:$0xff]  ;;  %p2404_p3 = por %p2403_p2, %p2402_p1 }
 0x32b   :  { %v1454_v39 = vmul.f32 %v1446_v31, %v3366_v23  ;;  %2153 = vmatprep.subr.mxu1 %v3366_v23  ;;  %v1461_v60 = vsel %vm626_vm1, %v1455_v54, 0.0  ;;  %v3622_v54 = vld [vmem:[#allocation36_spill] sm:$0xff] }
 0x32c   :  { %2154 = vmatpush3.msra.mxu1 %v3366_v23  ;;  %p2405_p4 = pnand %p2404_p3, %p2398_p0 }
 0x32d   :  { %v1459_v14 = vsel %vm626_vm1, %v1454_v39, 0.0  ;;  %2155 = vmatprep.subr.mxu1 %v3354_v20 }
 0x32e   :  { %v1460_v50 = vadd.f32 %v1459_v14, %v1458_v56  ;;  %2156 = vmatpush3.msra.mxu1 %v3354_v20 }
 0x32f   :  { %2157 = vmatprep.subr.mxu1 %v3356_v49 }
 0x330   :  { %v1462_v48 = vadd.f32 %v1461_v60, %v1460_v50  ;;  %2158 = vmatpush3.msra.mxu1 %v3356_v49  ;;  %v1587_v50 = vadd.f32 %v3254_v55, %v2823_v36 }
 0x331   :  { %2160 = vmatmul.mubr.msk.f32.vlgmr.msra.gmra.mxu1 %vm159_vm0, %v3613_v21  ;;  %v1586_v21 = vadd.f32 %v3252_v24, %v3553_v7  ;;  %v1591_v7 = vadd.f32 %v3260_v51, %v3591_v35  ;;  %v1592_v51 = vadd.f32 %v3266_v30, %v3594_v63 }
 0x332   :  { %v1463_v61 = vrot.slane %v1462_v48, 4  ;;  %2162 = vmatprep.mubr.msk.f32.mxu1 %vm159_vm0, %v3614_v58 }
 0x334   :  { %v1464_v38 = vadd.f32 %v1463_v61, %v1462_v48 }
 0x335   :  { %2163 = vmatmul.mubr.msk.f32.gmra.mxu1 %vm159_vm0, %v2396_v2  ;;  %v1589_v2 = vadd.f32 %v3256_v22, %v3588_v52  ;;  %v1590_v22 = vadd.f32 %v3262_v33, %v3592_v27 }
 0x336   :  { %2165 = vmatprep.mubr.msk.f32.mxu1 %vm159_vm0, %v3615_v37  ;;  %v1465_v57 = vrot.slane %v1464_v38, 2 }
 0x338   :  { %v1466_v15 = vadd.f32 %v1465_v57, %v1464_v38 }
 0x339   :  { %2166 = vmatmul.mubr.msk.f32.gmra.mxu1 %vm159_vm0, %v3616_v19 }
 0x33a   :  { %v1467_v3 = vrot.slane %v1466_v15, 1  ;;  %2168 = vmatprep.mubr.msk.f32.mxu1 %vm159_vm0, %v3617_v18 }
 0x33c   :  { %v1468_v8 = vadd.f32 %v1467_v3, %v1466_v15  ;;  %v1588_v15 = vadd.f32 %v3258_v53, %v3589_v9  ;;  %v1593_v53 = vadd.f32 %v3264_v13, %v3593_v41 }
 0x33d   :  { %2169 = vmatmul.mubr.msk.f32.gmra.mxu1 %vm159_vm0, %v3618_v1 }
 0x33e   :  { %v1477_v31 = vadd.f32 %v1476_v6, %v1468_v8  ;;  %2171 = vmatprep.mubr.msk.f32.mxu1 %vm159_vm0, %v3619_v29 }
 0x340   :  { %v1953_v4 = vmul.f32 -1.442695, %v1477_v31  ;;  %1484 = vst.msk [vmem:[#allocation2 + $0x2] sm:$0x1] %vm656_vm2, %v1477_v31 }
 0x341   :  { %2172 = vmatmul.mubr.msk.f32.gmra.mxu1 %vm159_vm0, %v3620_v43 }
 0x342   :  { %2338 = vpow2.f32 %v1953_v4  ;;  %2174 = vmatprep.mubr.msk.f32.mxu1 %vm159_vm0, %v3621_v32 }
 0x345   :  { %2175 = vmatmul.mubr.msk.f32.gmra.mxu1 %vm159_vm0, %v3622_v54 }
 0x34f   :  { %v2339_v39 = vpop.eup %2338 }
 0x350   :  { %v1481_v56 = vadd.f32 1.0, %v2339_v39 }
 0x352   :  { %2340 = vrcp.f32 %v1481_v56 }
 0x35f   :  { %v2341_v14 = vpop.eup %2340 }
 0x360   :  { %1485 = vst.msk [vmem:[#allocation2 + $0x6] sm:$0x1] %vm656_vm2, %v2341_v14 }
 0x3f1   :  { %v2161_v60 = vpop.f32.mrf.mxu1 }
 0x3f2   :  { %v1724_v48 = vadd.f32 %v2161_v60, %v1587_v50 }
 0x3f3   :  { %v1664_v61 = vpop.f32.mrf.mxu1 }
 0x3f4   :  { %v1968_v58 = vmul.f32 -1.442695, %v1724_v48  ;;  %v1723_v38 = vadd.f32 %v1664_v61, %v1586_v21 }
 0x3f5   :  { %v2164_v37 = vpop.f32.mrf.mxu1 }
 0x3f6   :  { %2342 = vpow2.f32 %v1968_v58  ;;  %v1967_v57 = vmul.f32 -1.442695, %v1723_v38  ;;  %v1726_v28 = vadd.f32 %v2164_v37, %v1589_v2 }
 0x3f7   :  { %v1674_v19 = vpop.f32.mrf.mxu1 }
 0x3f8   :  { %2344 = vpow2.f32 %v1967_v57  ;;  %v1970_v36 = vmul.f32 -1.442695, %v1726_v28  ;;  %v1725_v55 = vadd.f32 %v1674_v19, %v1588_v15  ;;  %v1595_v57 = vadd.f32 %v3268_v62, %v3602_v5 }
 0x3f9   :  { %v2167_v24 = vpop.f32.mrf.mxu1 }
 0x3fa   :  { %2346 = vpow2.f32 %v1970_v36  ;;  %v1969_v3 = vmul.f32 -1.442695, %v1725_v55  ;;  %v1728_v6 = vadd.f32 %v2167_v24, %v1591_v7  ;;  %v1594_v36 = vadd.f32 %v3270_v17, %v3604_v26 }
 0x3fb   :  { %v1684_v52 = vpop.f32.mrf.mxu1  ;;  %v1596_v17 = vadd.f32 %v3274_v44, %v3608_v59 }
 0x3fc   :  { %2348 = vpow2.f32 %v1969_v3  ;;  %v1972_v18 = vmul.f32 -1.442695, %v1728_v6  ;;  %v1727_v8 = vadd.f32 %v1684_v52, %v1590_v22  ;;  %v1597_v22 = vadd.f32 %v3272_v12, %v3606_v42 }
 0x3fd   :  { %v2170_v9 = vpop.f32.mrf.mxu1 }
 0x3fe   :  { %v1971_v1 = vmul.f32 -1.442695, %v1727_v8  ;;  %v1730_v31 = vadd.f32 %v2170_v9, %v1593_v53  ;;  %2350 = vpow2.f32 %v1972_v18 }
 0x3ff   :  { %v1694_v35 = vpop.f32.mrf.mxu1 }
 0x400   :  { %v1974_v29 = vmul.f32 -1.442695, %v1730_v31  ;;  %v1729_v4 = vadd.f32 %v1694_v35, %v1592_v51  ;;  %2352 = vpow2.f32 %v1971_v1 }
 0x401   :  { %v2173_v56 = vpop.f32.mrf.mxu1 }
 0x402   :  { %v1973_v43 = vmul.f32 -1.442695, %v1729_v4  ;;  %2354 = vpow2.f32 %v1974_v29  ;;  %v1780_v38 = vadd.f32 %v2173_v56, %v3601_v11 }
 0x403   :  { %v2343_v33 = vpop.eup %2342  ;;  %v1704_v14 = vpop.f32.mrf.mxu1 }
 0x404   :  { %v1756_v27 = vadd.f32 1.0, %v2343_v33  ;;  %2356 = vpow2.f32 %v1973_v43  ;;  %v1779_v15 = vadd.f32 %v1704_v14, %v3603_v34 }
 0x405   :  { %v2345_v32 = vpop.eup %2344  ;;  %v2176_v21 = vpop.f32.mrf.mxu1 }
 0x406   :  { %2358 = vrcp.f32 %v1756_v27  ;;  %v1755_v54 = vadd.f32 1.0, %v2345_v32  ;;  %v1782_v11 = vadd.f32 %v2176_v21, %v3605_v16 }
 0x407   :  { %v2347_v13 = vpop.eup %2346  ;;  %v1714_v7 = vpop.f32.mrf.mxu1 }
 0x408   :  { %2360 = vrcp.f32 %v1755_v54  ;;  %v1758_v41 = vadd.f32 1.0, %v2347_v13  ;;  %v1781_v34 = vadd.f32 %v1714_v7, %v3607_v45 }
 0x409   :  { %v2349_v39 = vpop.eup %2348 }
 0x40a   :  { %2362 = vrcp.f32 %v1758_v41  ;;  %v1757_v30 = vadd.f32 1.0, %v2349_v39 }
 0x40b   :  { %v2351_v63 = vpop.eup %2350 }
 0x40c   :  { %2364 = vrcp.f32 %v1757_v30  ;;  %v1760_v48 = vadd.f32 1.0, %v2351_v63 }
 0x40d   :  { %v2353_v50 = vpop.eup %2352 }
 0x40e   :  { %v1759_v58 = vadd.f32 1.0, %v2353_v50  ;;  %2366 = vrcp.f32 %v1760_v48 }
 0x40f   :  { %v2355_v60 = vpop.eup %2354 }
 0x410   :  { %v1762_v37 = vadd.f32 1.0, %v2355_v60  ;;  %2368 = vrcp.f32 %v1759_v58 }
 0x411   :  { %v2357_v61 = vpop.eup %2356 }
 0x412   :  { %v1761_v55 = vadd.f32 1.0, %v2357_v61  ;;  %2370 = vrcp.f32 %v1762_v37 }
 0x413   :  { %v2359_v2 = vpop.eup %2358 }
 0x414   :  { %v1784_v28 = vmul.f32 %v2359_v2, %v1780_v38 }
 0x415   :  { %v2361_v19 = vpop.eup %2360 }
 0x416   :  { %v1788_v24 = vadd.f32 %v1784_v28, %v1595_v57  ;;  %v1783_v3 = vmul.f32 %v2361_v19, %v1779_v15 }
 0x417   :  { %v2363_v6 = vpop.eup %2362 }
 0x418   :  { %2372 = vtanh.f32 %v1788_v24  ;;  %v1787_v62 = vadd.f32 %v1783_v3, %v1594_v36  ;;  %v1786_v5 = vmul.f32 %v2363_v6, %v1782_v11 }
 0x419   :  { %v2365_v52 = vpop.eup %2364  ;;  %2374 = vrcp.f32 %v1761_v55 }
 0x41a   :  { %2376 = vtanh.f32 %v1787_v62  ;;  %v1790_v26 = vadd.f32 %v1786_v5, %v1597_v22  ;;  %v1785_v18 = vmul.f32 %v2365_v52, %v1781_v34 }
 0x41b   :  { %v2367_v8 = vpop.eup %2366 }
 0x41c   :  { %2378 = vtanh.f32 %v1790_v26  ;;  %v1789_v16 = vadd.f32 %v1785_v18, %v1596_v17  ;;  %v1796_v42 = vsub.f32 1.0, %v2367_v8  ;;  %v1804_v31 = vmul.f32 %v2367_v8, %v3354_v20 }
 0x41d   :  { %v2369_v53 = vpop.eup %2368 }
 0x41e   :  { %2380 = vtanh.f32 %v1789_v16  ;;  %v1795_v45 = vsub.f32 1.0, %v2369_v53  ;;  %v1803_v29 = vmul.f32 %v2369_v53, %v3356_v49 }
 0x41f   :  { %v2371_v12 = vpop.eup %2370 }
 0x420   :  { %v1798_v59 = vsub.f32 1.0, %v2371_v12  ;;  %v1806_v33 = vmul.f32 %v2371_v12, %v3362_v25 }
 0x425   :  { %v2373_v9 = vpop.eup %2372 }
 0x426   :  { %v2375_v1 = vpop.eup %2374  ;;  %v1800_v51 = vmul.f32 %v2373_v9, %v1796_v42 }
 0x427   :  { %v2377_v35 = vpop.eup %2376  ;;  %v1797_v27 = vsub.f32 1.0, %v2375_v1  ;;  %v1805_v20 = vmul.f32 %v2375_v1, %v3366_v23 }
 0x428   :  { %v1799_v44 = vmul.f32 %v2377_v35, %v1795_v45  ;;  %v1808_v4 = vadd.f32 %v1804_v31, %v1800_v51 }
 0x429   :  { %v2379_v43 = vpop.eup %2378 }
 0x42a   :  { %v1802_v32 = vmul.f32 %v2379_v43, %v1798_v59  ;;  %v1807_v54 = vadd.f32 %v1803_v29, %v1799_v44  ;;  %v1828_v13 = vmul.f32 %v3348_v0, %v1808_v4 }
 0x42b   :  { %v2381_v41 = vpop.eup %2380 }
 0x42c   :  { %v1801_v39 = vmul.f32 %v2381_v41, %v1797_v27  ;;  %v1810_v56 = vadd.f32 %v1806_v33, %v1802_v32  ;;  %v1827_v30 = vmul.f32 %v3351_v46, %v1807_v54  ;;  %v1832_v14 = vsel %vm626_vm1, %v1828_v13, 0.0  ;;  %v1846_v46 = vpop.permute.xlu0 %1845 }
 0x42d   :  { %v1851_v57 = vrot.slane %v1846_v46, %v2951_v40 }
 0x42e   :  { %v1809_v63 = vadd.f32 %v1805_v20, %v1801_v39  ;;  %v1831_v49 = vsel %vm626_vm1, %v1827_v30, 0.0  ;;  %v1830_v60 = vmul.f32 %v3384_v47, %v1810_v56 }
 0x42f   :  { %v1833_v50 = vadd.f32 %v1832_v14, %v1831_v49 }
 0x430   :  { %v1829_v25 = vmul.f32 %v3373_v10, %v1809_v63  ;;  %v1836_v21 = vsel %vm626_vm1, %v1830_v60, 0.0 }
 0x432   :  { %v1834_v48 = vsel %vm626_vm1, %v1829_v25, 0.0 }
 0x433   :  { %v1835_v0 = vadd.f32 %v1834_v48, %v1833_v50 }
 0x435   :  { %v1837_v61 = vadd.f32 %v1836_v21, %v1835_v0 }
 0x437   :  { %v1838_v23 = vrot.slane %v1837_v61, 4 }
 0x439   :  { %v1839_v58 = vadd.f32 %v1838_v23, %v1837_v61 }
 0x43b   :  { %v1840_v38 = vrot.slane %v1839_v58, 2 }
 0x43d   :  { %v1841_v2 = vadd.f32 %v1840_v38, %v1839_v58 }
 0x43f   :  { %v1842_v37 = vrot.slane %v1841_v2, 1 }
 0x441   :  { %v1843_v28 = vadd.f32 %v1842_v37, %v1841_v2 }
 0x443   :  { %v1852_v15 = vadd.f32 %v1851_v57, %v1843_v28 }
 0x445   :  { %v1975_v19 = vmul.f32 -1.442695, %v1852_v15  ;;  %1859 = vst.msk [vmem:[#allocation2 + $0x3] sm:$0x1] %vm656_vm2, %v1852_v15 }
 0x447   :  { %2382 = vpow2.f32 %v1975_v19 }
 0x454   :  { %v2383_v10 = vpop.eup %2382 }
 0x455   :  { %v1856_v47 = vadd.f32 1.0, %v2383_v10 }
 0x457   :  { %2384 = vrcp.f32 %v1856_v47 }
 0x464   :  { %v2385_v36 = vpop.eup %2384 }
 0x465   :  { %1860 = vst.msk [vmem:[#allocation2 + $0x7] sm:$0x1] %vm656_vm2, %v2385_v36 }
 0x466   :  { %2408 = shalt.err (!%p2405_p4)
}
 0x467   :  { %1870 = dma.vmem_to_hbm [thread:$0]  %s1868_s20, 128, %s3467_s10, [#allocation3]  }
 0x468   :  { %2417 = dma.done.wait [#allocation3], 128  }
 0x469   :  { %2418 = vsyncadd [#allocation3], 4294967168 }
 0x46a   :  { %1874 = vsyncpa [#allocation3], 1 }

</bundles_post_ra>
